<compile_context>
chip_gen: v7x
topology: tpu7x:2x2x1
jax: 0.10.0
libtpu: 0.0.40
codegen_flags: <defaults>
</compile_context>

<pallas_src>
import math
import functools

import jax
import jax.numpy as jnp
from jax import lax
from jax.experimental import pallas as pl
from jax.experimental.pallas import tpu as pltpu


NEG_INF = -1e9   # masking value; real scores are orders of magnitude smaller


def _round_up(x, m):
    return ((x + m - 1) // m) * m


# ---------------------------------------------------------------------------
# Tiled linear:  y = x @ w_t + b   (w_t already pre-transposed to (K, N))
# ---------------------------------------------------------------------------

def _matmul_bias_kernel(x_ref, w_ref, b_ref, o_ref, acc_ref):
    @pl.when(pl.program_id(2) == 0)
    def _():
        acc_ref[...] = jnp.zeros_like(acc_ref)

    acc_ref[...] += jnp.dot(x_ref[...], w_ref[...],
                            preferred_element_type=jnp.float32)

    @pl.when(pl.program_id(2) == pl.num_programs(2) - 1)
    def _():
        o_ref[...] = (acc_ref[...] + b_ref[...]).astype(o_ref.dtype)


def _tile_and_pad(dim, preferred):
    """Pick a tile; pad the dim up instead of falling back to one giant tile."""
    for t in preferred:
        if dim >= t and dim % t == 0:
            return t, dim
    if dim <= preferred[-1]:
        return dim, dim                       # single full-dim block is legal
    t = preferred[-1]
    return t, _round_up(dim, t)


def linear(x, w_t, b, *, out_dtype=None):
    M, K = x.shape
    K2, N = w_t.shape
    assert K == K2
    out_dtype = out_dtype or x.dtype

    tm, Mp = _tile_and_pad(M, (512, 256, 128))
    tn, Np = _tile_and_pad(N, (512, 256, 128))
    tk, Kp = _tile_and_pad(K, (512, 256, 128))
    if Mp != M:
        x = jnp.pad(x, ((0, Mp - M), (0, 0)))
    if Kp != K:
        x = jnp.pad(x, ((0, 0), (0, Kp - K)))
        w_t = jnp.pad(w_t, ((0, Kp - K), (0, 0)))
    if Np != N:
        w_t = jnp.pad(w_t, ((0, 0), (0, Np - N)))
        b = jnp.pad(b, ((0, Np - N),))
    b2 = b.reshape(1, Np).astype(jnp.float32)

    out = pl.pallas_call(
        _matmul_bias_kernel,
        out_shape=jax.ShapeDtypeStruct((Mp, Np), out_dtype),
        grid=(Mp // tm, Np // tn, Kp // tk),
        in_specs=[
            pl.BlockSpec((tm, tk), lambda i, j, k: (i, k)),
            pl.BlockSpec((tk, tn), lambda i, j, k: (k, j)),
            pl.BlockSpec((1, tn), lambda i, j, k: (0, j)),
        ],
        out_specs=pl.BlockSpec((tm, tn), lambda i, j, k: (i, j)),
        scratch_shapes=[pltpu.VMEM((tm, tn), jnp.float32)],
        compiler_params=pltpu.CompilerParams(
            dimension_semantics=("parallel", "parallel", "arbitrary"),
            vmem_limit_bytes=64 * 1024 * 1024),
    )(x, w_t, b2)
    if Mp != M or Np != N:
        out = out[:M, :N]
    return out


# ---------------------------------------------------------------------------
# Flash-style Longformer attention core
#   grid = (B, n_q_blocks, n_kv_blocks); all heads handled per grid step.
#   Inputs are lane-block views of the single fused projection (B, T, 6E)
#   laid out as [q | qg | k | v | kg | vg] along the last dim.
# ---------------------------------------------------------------------------

def _band_bounds(qi, *, block_q, block_k, window, n_kv):
    """kv-block index range overlapping q-block qi's sliding window."""
    q_lo = qi * block_q
    q_hi = q_lo + block_q - 1
    lo = jnp.maximum(q_lo - window, 0) // block_k
    hi = jnp.minimum((q_hi + window) // block_k, n_kv - 1)
    return lo, hi


def _longformer_attn_kernel(
    kv_has_g_ref, q_has_g_ref,                   # scalar prefetch (SMEM)
    q_ref, qg_ref, kv_ref, kgvg_ref,             # (1,blk,E) / (1,blk,2E) views
    kinfo_ref, qinfo_ref,                        # (1,2,block_k) / (1,block_q,2)
    o_ref,                                       # (1, block_q, E)
    m_sc, l_sc, acc_sc, gm_sc, gl_sc, gacc_sc,   # VMEM scratch (per head)
    *, num_heads, head_dim, block_q, block_k, window, n_kv, scale,
):
    b = pl.program_id(0)
    qi = pl.program_id(1)
    ki = pl.program_id(2)
    H, D = num_heads, head_dim
    E = H * D

    @pl.when(ki == 0)
    def _init():
        m_sc[...] = jnp.full_like(m_sc, -jnp.inf)
        l_sc[...] = jnp.zeros_like(l_sc)
        acc_sc[...] = jnp.zeros_like(acc_sc)
        gm_sc[...] = jnp.full_like(gm_sc, -jnp.inf)
        gl_sc[...] = jnp.zeros_like(gl_sc)
        gacc_sc[...] = jnp.zeros_like(gacc_sc)

    mk = kinfo_ref[0, 0:1, :]            # (1, block_k)  1.0 => padding key
    gk = kinfo_ref[0, 1:2, :]            # (1, block_k)  1.0 => global key

    lo, hi = _band_bounds(qi, block_q=block_q, block_k=block_k,
                          window=window, n_kv=n_kv)
    in_band = jnp.logical_and(ki >= lo, ki <= hi)
    kv_block_has_global = kv_has_g_ref[b, ki] > 0
    q_block_has_global = q_has_g_ref[b, qi] > 0

    q_start = qi * block_q
    k_start = ki * block_k

    # ---- local sliding-window path (also attends to global keys) -----------
    @pl.when(jnp.logical_or(in_band, kv_block_has_global))
    def _local():
        qx = q_ref[0]                    # (block_q, E)
        kvx = kv_ref[0]                  # (block_k, 2E): [k | v]
        ii = q_start + lax.broadcasted_iota(jnp.int32, (block_q, block_k), 0)
        jj = k_start + lax.broadcasted_iota(jnp.int32, (block_q, block_k), 1)
        band = jnp.abs(ii - jj) <= window
        allowed = jnp.logical_and(jnp.logical_or(band, gk > 0.5), mk < 0.5)
        for h in range(H):
            qh = qx[:, h * D:(h + 1) * D]
            kh = kvx[:, h * D:(h + 1) * D]
            vh = kvx[:, E + h * D:E + (h + 1) * D]
            s = lax.dot_general(qh, kh, (((1,), (1,)), ((), ())),
                                preferred_element_type=jnp.float32) * scale
            s = jnp.where(allowed, s, NEG_INF)
            m_prev = m_sc[h]
            m_new = jnp.maximum(m_prev, jnp.max(s, axis=-1, keepdims=True))
            alpha = jnp.exp(m_prev - m_new)
            p = jnp.exp(s - m_new)
            l_sc[h] = alpha * l_sc[h] + jnp.sum(p, axis=-1, keepdims=True)
            acc_sc[h] = alpha * acc_sc[h] + jnp.dot(
                p.astype(vh.dtype), vh, preferred_element_type=jnp.float32)
            m_sc[h] = m_new

    # ---- global-query path (full attention with the *_global projections) --
    @pl.when(q_block_has_global)
    def _global():
        qgx = qg_ref[0]                  # (block_q, E)
        kgv = kgvg_ref[0]                # (block_k, 2E): [kg | vg]
        for h in range(H):
            qh = qgx[:, h * D:(h + 1) * D]
            kh = kgv[:, h * D:(h + 1) * D]
            vh = kgv[:, E + h * D:E + (h + 1) * D]
            gs = lax.dot_general(qh, kh, (((1,), (1,)), ((), ())),
                                 preferred_element_type=jnp.float32) * scale
            gs = jnp.where(mk < 0.5, gs, NEG_INF)
            gm_prev = gm_sc[h]
            gm_new = jnp.maximum(gm_prev, jnp.max(gs, axis=-1, keepdims=True))
            ga = jnp.exp(gm_prev - gm_new)
            gp = jnp.exp(gs - gm_new)
            gl_sc[h] = ga * gl_sc[h] + jnp.sum(gp, axis=-1, keepdims=True)
            gacc_sc[h] = ga * gacc_sc[h] + jnp.dot(
                gp.astype(vh.dtype), vh, preferred_element_type=jnp.float32)
            gm_sc[h] = gm_new

    # ---- finalize: normalize, pick global rows, zero padding rows ----------
    @pl.when(ki == pl.num_programs(2) - 1)
    def _fin():
        qinfo = qinfo_ref[0]             # (block_q, 2)
        mq = qinfo[:, 0:1]               # 1.0 => padding query
        gq = qinfo[:, 1:2]               # 1.0 => global query
        locs, globs = [], []
        for h in range(H):
            locs.append(acc_sc[h] * pl.reciprocal(l_sc[h], approx=True))
            globs.append(gacc_sc[h] * pl.reciprocal(
                jnp.maximum(gl_sc[h], 1e-30), approx=True))
        local = jnp.concatenate(locs, axis=-1)     # (block_q, E)
        glob = jnp.concatenate(globs, axis=-1)     # (block_q, E)
        out = jnp.where(gq > 0.5, glob, local)
        out = jnp.where(mq > 0.5, 0.0, out)
        o_ref[0] = out.astype(o_ref.dtype)         # single lane-dense store


def longformer_attention_core(qkv, kinfo, qinfo, kv_has_g, q_has_g, *,
                              num_heads, window, block_q, block_k):
    B, T, E6 = qkv.shape
    E = E6 // 6
    D = E // num_heads
    n_q = T // block_q
    n_kv = T // block_k
    scale = 1.0 / math.sqrt(D)

    kernel = functools.partial(
        _longformer_attn_kernel, num_heads=num_heads, head_dim=D,
        block_q=block_q, block_k=block_k, window=window, n_kv=n_kv, scale=scale)

    bounds = functools.partial(_band_bounds, block_q=block_q, block_k=block_k,
                               window=window, n_kv=n_kv)

    def q_idx(b, qi, ki, kv_g, q_g):
        return (b, qi, 0)                               # cols [0:E]

    def qg_idx(b, qi, ki, kv_g, q_g):
        # q-blocks without global queries never read qg: constant index.
        return (b, jnp.where(q_g[b, qi] > 0, qi, 0), 1)  # cols [E:2E]

    def kv_idx(b, qi, ki, kv_g, q_g):
        # Out-of-window kv blocks with no global keys are never read:
        # clamp their index into the band so Pallas elides the (re)fetch.
        lo, hi = bounds(qi)
        needed = jnp.logical_or(jnp.logical_and(ki >= lo, ki <= hi),
                                kv_g[b, ki] > 0)
        return (b, jnp.where(needed, ki, jnp.clip(ki, lo, hi)), 1)  # [2E:4E]

    def kgvg_idx(b, qi, ki, kv_g, q_g):
        # Only q-blocks containing global queries stream the *_global k/v.
        return (b, jnp.where(q_g[b, qi] > 0, ki, 0), 2)  # cols [4E:6E]

    def kinfo_idx(b, qi, ki, kv_g, q_g):
        lo, hi = bounds(qi)
        needed = jnp.logical_or(
            jnp.logical_or(jnp.logical_and(ki >= lo, ki <= hi),
                           kv_g[b, ki] > 0),
            q_g[b, qi] > 0)
        return (b, 0, jnp.where(needed, ki, jnp.clip(ki, lo, hi)))

    def qinfo_idx(b, qi, ki, kv_g, q_g):
        return (b, qi, 0)

    def out_idx(b, qi, ki, kv_g, q_g):
        return (b, qi, 0)

    grid_spec = pltpu.PrefetchScalarGridSpec(
        num_scalar_prefetch=2,
        grid=(B, n_q, n_kv),
        in_specs=[
            pl.BlockSpec((1, block_q, E), q_idx),        # q
            pl.BlockSpec((1, block_q, E), qg_idx),       # qg
            pl.BlockSpec((1, block_k, 2 * E), kv_idx),   # k | v
            pl.BlockSpec((1, block_k, 2 * E), kgvg_idx), # kg | vg
            pl.BlockSpec((1, 2, block_k), kinfo_idx),
            pl.BlockSpec((1, block_q, 2), qinfo_idx),
        ],
        out_specs=pl.BlockSpec((1, block_q, E), out_idx),
        scratch_shapes=[
            pltpu.VMEM((num_heads, block_q, 1), jnp.float32),   # m
            pltpu.VMEM((num_heads, block_q, 1), jnp.float32),   # l
            pltpu.VMEM((num_heads, block_q, D), jnp.float32),   # acc
            pltpu.VMEM((num_heads, block_q, 1), jnp.float32),   # gm
            pltpu.VMEM((num_heads, block_q, 1), jnp.float32),   # gl
            pltpu.VMEM((num_heads, block_q, D), jnp.float32),   # gacc
        ],
    )
    # TODO(synk): further shrink the kv grid axis to (band_blocks + n_global
    # blocks) via a scalar-prefetched per-(b,qi) schedule table; needs a static
    # upper bound on the number of kv blocks containing global tokens.
    return pl.pallas_call(
        kernel,
        out_shape=jax.ShapeDtypeStruct((B, T, E), qkv.dtype),
        grid_spec=grid_spec,
        compiler_params=pltpu.CompilerParams(
            dimension_semantics=("parallel", "parallel", "arbitrary")),
    )(kv_has_g, q_has_g, qkv, qkv, qkv, qkv, kinfo, qinfo)


def _choose_attn_block(T):
    if T % 128 != 0:
        if T <= 256:
            return T, T                       # single full-length block
        return 128, _round_up(T, 128)         # pad instead of giant block
    if T % 256 == 0 and T >= 2048:
        return 256, T                         # fewer grid steps for long seqs
    return 128, T


# ---------------------------------------------------------------------------
# Module
# ---------------------------------------------------------------------------

class LongformerSelfAttentionForMBartPallas:
    """JAX/Pallas re-implementation of LongformerSelfAttentionForMBart.forward."""

    def __init__(self, d_model, num_heads, attention_window, key,
                 compute_dtype=jnp.bfloat16):
        assert d_model % num_heads == 0
        self.embed_dim = d_model
        self.num_heads = num_heads
        self.head_dim = d_model // num_heads
        self.one_sided_window = attention_window // 2
        self.compute_dtype = compute_dtype

        # Fused projection column order [q | qg | k | v | kg | vg] so the
        # attention kernel addresses each group as a lane-block of the single
        # projection output (no head-split transposes, no splits).
        names = ["query", "query_global", "key", "value",
                 "key_global", "value_global", "output"]
        keys = jax.random.split(key, 2 * len(names))
        raw = {}
        for i, name in enumerate(names):
            w = 0.05 * jax.random.normal(keys[2 * i], (d_model, d_model),
                                         jnp.float32)
            b = 0.05 * jax.random.normal(keys[2 * i + 1], (d_model,),
                                         jnp.float32)
            raw[name] = (w, b)
        proj = names[:6]
        self.w_qkv_t = jnp.concatenate(
            [raw[n][0].T for n in proj], axis=1).astype(compute_dtype)  # (E,6E)
        self.b_qkv = jnp.concatenate([raw[n][1] for n in proj], axis=0)  # (6E,)
        self.w_out_t = raw["output"][0].T.astype(compute_dtype)         # (E,E)
        self.b_out = raw["output"][1]

    def __call__(self, hidden_states, attention_mask):
        B, T, E = hidden_states.shape
        assert E == self.embed_dim
        assert E % 128 == 0, "d_model must be a multiple of 128"
        # TODO(synk): support d_model % 128 != 0 (split projections instead of
        # lane-blocking the fused output).
        H = self.num_heads
        cdt = self.compute_dtype

        # The MBart wrapper flips the mask sign before handing it to Longformer.
        lf_mask = attention_mask * -1.0                 # >0 global, <0 padding
        is_masked = (lf_mask < 0).astype(jnp.float32)   # (B, T) padding tokens
        is_global = (lf_mask > 0).astype(jnp.float32)   # (B, T) global tokens

        # One fused, tiled matmul for all six projections; its output is
        # consumed IN PLACE by the attention kernel (no transpose round trip).
        x2d = hidden_states.reshape(B * T, E).astype(cdt)
        qkv = linear(x2d, self.w_qkv_t, self.b_qkv)     # (B*T, 6E) bf16
        qkv3d = qkv.reshape(B, T, 6 * E)                # metadata-only reshape

        block, Tp = _choose_attn_block(T)
        if Tp != T:
            qkv3d = jnp.pad(qkv3d, ((0, 0), (0, Tp - T), (0, 0)))
            is_masked = jnp.pad(is_masked, ((0, 0), (0, Tp - T)),
                                constant_values=1.0)    # pad => padding tokens
            is_global = jnp.pad(is_global, ((0, 0), (0, Tp - T)))

        n_blk = Tp // block
        kinfo = jnp.stack([is_masked, is_global], axis=1)    # (B, 2, Tp)
        qinfo = jnp.stack([is_masked, is_global], axis=-1)   # (B, Tp, 2)
        blk_has_g = (is_global.reshape(B, n_blk, block).max(axis=-1)
                     > 0).astype(jnp.int32)                  # (B, n_blk)

        attn = longformer_attention_core(
            qkv3d, kinfo, qinfo, blk_has_g, blk_has_g,
            num_heads=H, window=self.one_sided_window,
            block_q=block, block_k=block)                    # (B, Tp, E)
        if Tp != T:
            attn = attn[:, :T, :]

        # Heads already live contiguously in the last dim -> feed the output
        # projection directly (no head-recombine transpose round trip).
        attn2d = attn.reshape(B * T, E)
        attn_output = linear(attn2d, self.w_out_t, self.b_out,
                             out_dtype=hidden_states.dtype).reshape(B, T, E)

        # output_attentions=False -> (attn_output, None, None)
        return attn_output, None, None
        # TODO(synk): output_attentions=True branch (attention probabilities)
        # not implemented.


# ---------------------------------------------------------------------------
# Pure-JAX reference (same weights / semantics) for a numerical sanity check
# ---------------------------------------------------------------------------

def _reference_forward(hidden_states, attention_mask, module):
    B, T, E = hidden_states.shape
    H, D = module.num_heads, module.head_dim
    w = module.one_sided_window
    lf = attention_mask * -1.0
    is_masked = lf < 0
    is_global = lf > 0

    wt = module.w_qkv_t.astype(jnp.float32)
    proj = hidden_states.reshape(B * T, E) @ wt + module.b_qkv
    q, qg, k, v, kg, vg = [
        proj[:, i * E:(i + 1) * E].reshape(B, T, H, D).transpose(0, 2, 1, 3)
        for i in range(6)]
    scale = 1.0 / math.sqrt(D)

    idx = jnp.arange(T)
    band = jnp.abs(idx[:, None] - idx[None, :]) <= w
    allowed = (band[None] | is_global[:, None, :]) & (~is_masked[:, None, :])
    s = jnp.einsum("bhqd,bhkd->bhqk", q, k,
                   precision=lax.Precision.HIGHEST) * scale
    s = jnp.where(allowed[:, None], s, NEG_INF)
    local = jnp.einsum("bhqk,bhkd->bhqd", jax.nn.softmax(s, axis=-1), v,
                       precision=lax.Precision.HIGHEST)

    gs = jnp.einsum("bhqd,bhkd->bhqk", qg, kg,
                    precision=lax.Precision.HIGHEST) * scale
    gs = jnp.where(~is_masked[:, None, None, :], gs, NEG_INF)
    glob = jnp.einsum("bhqk,bhkd->bhqd", jax.nn.softmax(gs, axis=-1), vg,
                      precision=lax.Precision.HIGHEST)

    attn = jnp.where(is_global[:, None, :, None], glob, local)
    attn = jnp.where(is_masked[:, None, :, None], 0.0, attn)
    attn2d = attn.transpose(0, 2, 1, 3).reshape(B * T, E)
    out = attn2d @ module.w_out_t.astype(jnp.float32) + module.b_out
    return out.reshape(B, T, E)


# ---------------------------------------------------------------------------
# Demo
# ---------------------------------------------------------------------------

if __name__ == "__main__":
    B, T, E, H = 2, 512, 128, 4        # batch, seq, d_model, heads
    attention_window = 128             # -> one-sided window of 64

    root = jax.random.PRNGKey(0)
    k_hidden, k_params = jax.random.split(root)

    hidden_states = jax.random.normal(k_hidden, (B, T, E), jnp.float32)

    # attention_mask convention of the MBart wrapper:
    #   0 = local attention, -1 = global attention token, +1 = padding
    mask = jnp.zeros((B, T), jnp.float32)
    mask = mask.at[0, 0].set(-1.0)         # batch 0: token 0 global
    mask = mask.at[0, 448:].set(1.0)       # batch 0: last 64 tokens padding
    mask = mask.at[1, 0:2].set(-1.0)       # batch 1: tokens 0,1 global

    module = LongformerSelfAttentionForMBartPallas(
        d_model=E, num_heads=H, attention_window=attention_window, key=k_params)

    attn_output, attn_weights, _ = module(hidden_states, mask)
    attn_output = jax.block_until_ready(attn_output)

    assert attn_output.shape == (B, T, E)
    assert bool(jnp.all(jnp.isfinite(attn_output)))

    ref = _reference_forward(hidden_states, mask, module)
    max_err = float(jnp.max(jnp.abs(attn_output - ref)))
    assert max_err < 2e-2, f"kernel/reference mismatch: max abs err = {max_err}"

    print("KERNEL_OK")
</pallas_src>

<mosaic_0001>
module attributes {stable_mosaic.version = 11 : i64} {
  func.func @_matmul_bias_kernel(%arg0: i32, %arg1: i32, %arg2: i32, %arg3: memref<512x128xbf16, #tpu.memory_space<vmem>>, %arg4: memref<128x256xbf16, #tpu.memory_space<vmem>>, %arg5: memref<1x256xf32, #tpu.memory_space<vmem>>, %arg6: memref<512x256xbf16, #tpu.memory_space<vmem>>, %arg7: memref<512x256xf32, #tpu.memory_space<vmem>>) attributes {dimension_semantics = [#tpu.dimension_semantics<parallel>, #tpu.dimension_semantics<parallel>, #tpu.dimension_semantics<arbitrary>], iteration_bounds = array<i64: 2, 3, 1>, scalar_prefetch = 0 : i64, scratch_operands = 1 : i64, tpu.core_type = #tpu.core_type<tc>, window_params = [{transform_indices = @transform_0, window_bounds = array<i64: 512, 128>}, {transform_indices = @transform_1, window_bounds = array<i64: 128, 256>}, {transform_indices = @transform_2, window_bounds = array<i64: 1, 256>}, {transform_indices = @transform_3, window_bounds = array<i64: 512, 256>}]} {
    %c0_i32 = arith.constant 0 : i32
    %0 = arith.cmpi eq, %arg2, %c0_i32 : i32
    %1 = arith.extui %0 : i1 to i32
    %c0_i32_0 = arith.constant 0 : i32
    %2 = arith.cmpi ne, %1, %c0_i32_0 : i32
    scf.if %2 {
      %cst_10 = arith.constant 0.000000e+00 : f32
      %12 = vector.broadcast %cst_10 : f32 to vector<512x256xf32>
      %c0_11 = arith.constant 0 : index
      %c0_12 = arith.constant 0 : index
      %13 = vector.load %arg7[%c0_11, %c0_12] : memref<512x256xf32, #tpu.memory_space<vmem>>, vector<512x256xf32>
      tpu.vector_store %arg7[%c0_11, %c0_12], %12 {strides = array<i32>} : memref<512x256xf32, #tpu.memory_space<vmem>>, vector<512x256xf32>,
    } else {
    }
    %c0 = arith.constant 0 : index
    %c0_1 = arith.constant 0 : index
    %3 = vector.load %arg7[%c0, %c0_1] : memref<512x256xf32, #tpu.memory_space<vmem>>, vector<512x256xf32>
    %c0_2 = arith.constant 0 : index
    %c0_3 = arith.constant 0 : index
    %4 = vector.load %arg3[%c0_2, %c0_3] : memref<512x128xbf16, #tpu.memory_space<vmem>>, vector<512x128xbf16>
    %c0_4 = arith.constant 0 : index
    %c0_5 = arith.constant 0 : index
    %5 = vector.load %arg4[%c0_4, %c0_5] : memref<128x256xbf16, #tpu.memory_space<vmem>>, vector<128x256xbf16>
    %cst = arith.constant dense<0.000000e+00> : vector<512x256xf32>
    %6 = tpu.matmul %4, %5, %cst {dimension_numbers = #tpu.dot_dimension_numbers<[1], [0], [0], [1], [0, 0, 1, 1], [], []>} : vector<512x128xbf16>, vector<128x256xbf16>, vector<512x256xf32> -> vector<512x256xf32>
    %7 = arith.addf %3, %6 : vector<512x256xf32>
    %c0_6 = arith.constant 0 : index
    %c0_7 = arith.constant 0 : index
    %8 = vector.load %arg7[%c0_6, %c0_7] : memref<512x256xf32, #tpu.memory_space<vmem>>, vector<512x256xf32>
    tpu.vector_store %arg7[%c0_6, %c0_7], %7 {strides = array<i32>} : memref<512x256xf32, #tpu.memory_space<vmem>>, vector<512x256xf32>,
    %c0_i32_8 = arith.constant 0 : i32
    %9 = arith.cmpi eq, %arg2, %c0_i32_8 : i32
    %10 = arith.extui %9 : i1 to i32
    %c0_i32_9 = arith.constant 0 : i32
    %11 = arith.cmpi ne, %10, %c0_i32_9 : i32
    scf.if %11 {
      %c0_10 = arith.constant 0 : index
      %c0_11 = arith.constant 0 : index
      %12 = vector.load %arg7[%c0_10, %c0_11] : memref<512x256xf32, #tpu.memory_space<vmem>>, vector<512x256xf32>
      %c0_12 = arith.constant 0 : index
      %c0_13 = arith.constant 0 : index
      %13 = vector.load %arg5[%c0_12, %c0_13] : memref<1x256xf32, #tpu.memory_space<vmem>>, vector<1x256xf32>
      %14 = vector.broadcast %13 : vector<1x256xf32> to vector<512x256xf32>
      %15 = arith.addf %12, %14 : vector<512x256xf32>
      %16 = arith.truncf %15 : vector<512x256xf32> to vector<512x256xbf16>
      %c0_14 = arith.constant 0 : index
      %c0_15 = arith.constant 0 : index
      %17 = vector.load %arg6[%c0_14, %c0_15] : memref<512x256xbf16, #tpu.memory_space<vmem>>, vector<512x256xbf16>
      tpu.vector_store %arg6[%c0_14, %c0_15], %16 {strides = array<i32>} : memref<512x256xbf16, #tpu.memory_space<vmem>>, vector<512x256xbf16>,
    } else {
    }
    return
  }
  func.func @transform_0(%arg0: i32, %arg1: i32, %arg2: i32) -> (i32, i32) {
    %c0_i32 = arith.constant 0 : i32
    return %arg0, %arg2 : i32, i32
  }
  func.func @transform_1(%arg0: i32, %arg1: i32, %arg2: i32) -> (i32, i32) {
    %c0_i32 = arith.constant 0 : i32
    return %arg2, %arg1 : i32, i32
  }
  func.func @transform_2(%arg0: i32, %arg1: i32, %arg2: i32) -> (i32, i32) {
    %c0_i32 = arith.constant 0 : i32
    %c0_i32_0 = arith.constant 0 : i32
    return %c0_i32, %arg1 : i32, i32
  }
  func.func @transform_3(%arg0: i32, %arg1: i32, %arg2: i32) -> (i32, i32) {
    %c0_i32 = arith.constant 0 : i32
    return %arg0, %arg1 : i32, i32
  }
}

</mosaic_0001>

<bundles_post_ra>
// kernel: tpu_custom_call.1
= control target key start
LH: loop header
LB: loop body
LE: loop exit
PB: predicated region body
PF: predicated region fallthrough
CT: control target
= control target key end

     0   :  { %s3759_s0 = inlined_call_operand.hbm [shape: bf16[1024,128], index: 0, kind: input, shape index: {}]   ;;  %s3760_s1 = inlined_call_operand.hbm [shape: bf16[128,768], index: 1, kind: input, shape index: {}]   ;;  %s3761_s2 = inlined_call_operand.hbm [shape: f32[1,768], index: 2, kind: input, shape index: {}]   ;;  %s3762_s3 = inlined_call_operand.hbm [shape: bf16[1024,768], index: 3, kind: output, shape index: {}]  }
   0x1   :  { %3778 = sst [smem:[#allocation25_spill]] %s3759_s0 }
   0x2   :  { %3779 = sst [smem:[#allocation26_spill]] %s3760_s1 }
   0x3   :  { %3780 = sst [smem:[#allocation27_spill]] %s3762_s3 }
   0x4   :  { %8 = vsyncpa [#allocation4], 0 }
   0x5   :  { %10 = vsyncpa [#allocation4 + $0x1], 0 }
   0x6   :  { %11 = vsyncpa [#allocation7], 0 }
   0x7   :  { %13 = vsyncpa [#allocation7 + $0x1], 0 }
   0x8   :  { %14 = vsyncpa [#allocation5], 0 }
   0x9   :  { %16 = vsyncpa [#allocation5 + $0x1], 0  ;;  %s3092_s12 = smov 0   ;;  %s3094_s13 = smov 0  }
   0xa   :  { %s3096_s14 = smov 0   ;;  %s3098_s15 = smov 0  }
   0xb   :  { %s3100_s16 = smov 0   ;;  %s3102_s17 = smov 0  }
   0xc   :  { %s3104_s18 = smov 0   ;;  %s3106_s19 = smov 0  }
   0xd   :  { %s3108_s20 = smov 0   ;;  %s3110_s21 = smov 0  }
   0xe   :  { %s3112_s22 = smov 0   ;;  %s3114_s23 = smov 0  }
   0xf   :  { %s3116_s24 = smov 0   ;;  %s3118_s25 = smov 0  }
  0x10 LB: > { %3781 = sst [smem:[#allocation13_spill]] %s3013_s14  ;;  %s37_s26 = sadd.s32 1, %s3049_s23  ;;  %s3057_s25 = sphi %s3118_s25, %s22_s25   ;;  %s3053_s24 = sphi %s3116_s24, %s3830_s24   ;;  %s3049_s23 = sphi %s3114_s23, %s3838_s23   ;;  %s3045_s22 = sphi %s3112_s22, %s3828_s22   ;;  %s3041_s21 = sphi %s3110_s21, %s3837_s21   ;;  %s3037_s20 = sphi %s3108_s20, %s3827_s20   ;;  %s3033_s19 = sphi %s3106_s19, %s3836_s19   ;;  %s3029_s18 = sphi %s3104_s18, %s3835_s18   ;;  %s3025_s17 = sphi %s3102_s17, %s3825_s17   ;;  %s3021_s16 = sphi %s3100_s16, %s3834_s16   ;;  %s3017_s15 = sphi %s3098_s15, %s3833_s15   ;;  %s3013_s14 = sphi %s3096_s14, %s3823_s14   ;;  %s3009_s13 = sphi %s3094_s13, %s3832_s13   ;;  %s3005_s12 = sphi %s3092_s12, %s3831_s12  }
  0x11   : > { %3782 = sst [smem:[#allocation14_spill]] %s3025_s17  ;;  %p3765_p0 = scmp.eq.s32.totalorder %s3057_s25, 0 }
  0x12   : > { %3783 = sst [smem:[#allocation15_spill]] %s3037_s20  ;;  %p3166_p1 = scmp.ge.s32.totalorder %s37_s26, 3 }
  0x13   : > { %3784 = sst [smem:[#allocation16_spill]] %s3041_s21  ;;  %p85_p2 = scmp.ne.s32.totalorder %s3025_s17, %s3021_s16 }
  0x14   : > { %3785 = sst [smem:[#allocation17_spill]] %s3045_s22  ;;  %p3764_p4 = scmp.lt.s32.totalorder %s3057_s25, 6 }
  0x15   : > { %3786 = sst [smem:[#allocation18_spill]] %s3053_s24  ;;  %p87_p5 = por %p85_p2, %p3765_p0 }
  0x16   : > { %s191_s29 = sand.u32 1, %s3057_s25   ;;  %s3763_s30 = sand.u32 1, %s3025_s17  }
  0x17   : > { %s2402_s4 = sshll.u32 %s3763_s30, 7  ;;  %s2533_s5 = sshll.u32 %s3049_s23, 7 }
  0x18   : > { %s3788_s1 = sld [smem:[#allocation26_spill]]  ;;  %s195_s9 = scalar_lea.vmem [#allocation6], %s2402_s4 }
  0x19   : > { %s205_s10 = sshll.u32 %s195_s9, 4  ;;  %p3190_p6 = pnand %p3764_p4, %p87_p5  ;;  %s3194_s10 = int_to_ptr.vmem [resolvable:$true] %s205_s10 }
  0x1a   : > { %s3197_s30 = scalar_lea.sflag [#allocation7], %s191_s29 }
  0x1b   : > { %p3772_p9 = pneg %p3190_p6 }
  0x1e   : > { %s3186_s8 = scalar_lea.hbm %s3788_s1, %s2533_s5  ;;  %s2822_s7 = scalar_lea.hbm %s3788_s1, 6144 }
  0x1f   : > { %s2817_s5 = scalar_lea.hbm %s3186_s8, 2048  ;;  %p2823_p12 = scmp.lt.u32.totalorder %s3186_s8, %s3788_s1 }
  0x20   : > { %p2818_p8 = scmp.ne.s32.totalorder %s3186_s8, %s2817_s5  ;;  %p2824_p13 = scmp.lt.u32.totalorder %s2822_s7, %s2817_s5 }
  0x21   : > { %p2826_p5 = scmp.lt.u32.totalorder %s2817_s5, %s3186_s8 }
  0x22   : > { %p2820_p10 = pnand %p3772_p9, %p2818_p8  ;;  %p2825_p2 = por %p2824_p13, %p2823_p12 }
  0x24   : > { %p2821_p11 = pneg %p2820_p10  ;;  %p2827_p4 = por %p2826_p5, %p2825_p2 }
  0x26   : > { %p2828_p3 = pnand %p2827_p4, %p2821_p11 }
  0x28   : > { %2831 = shalt.err (!%p2828_p3)
}
  0x29   : > { %s2832_s29 = scalar_lea.vmem %s3194_s10, 2048  ;;  %s3059_s4 = smov [#allocation6]  }
  0x2a   : > { %p2833_p8 = scmp.ne.s32.totalorder %s3194_s10, %s2832_s29  ;;  %s2837_s6 = sshll.u32 %s3059_s4, 4  ;;  %s2838_s6 = int_to_ptr.vmem [resolvable:$false] %s2837_s6 }
  0x2b   : > { %s2839_s28 = scalar_lea.vmem %s2838_s6, 4096  ;;  %p2840_p7 = scmp.lt.s32.totalorder %s3194_s10, %s2838_s6 }
  0x2c   : > { %p2835_p10 = pnand %p2833_p8, %p3772_p9  ;;  %p2841_p12 = scmp.lt.s32.totalorder %s2839_s28, %s2832_s29 }
  0x2e   : > { %p2836_p0 = pneg %p2835_p10  ;;  %p2842_p13 = por %p2841_p12, %p2840_p7 }
  0x30   : > { %p2843_p2 = pnand %p2842_p13, %p2836_p0 }
  0x32   : > { %2846 = shalt.err (!%p2843_p2)
}
  0x33   : > { %s3060_s5 = smov 384   ;;  %s3061_s7 = smov 128  }
  0x34   : > { %s3062_s9 = smov 8   ;;  %p232_p0 = scmp.lt.s32.totalorder %s3057_s25, 7 }
  0x35   : > { %2630 = dma.hbm_to_vmem [thread:$0]  (!%p3190_p6), %s3186_s8, 2048, %s3194_s10, %s3197_s30, %s3060_s5, %s3061_s7, %s3062_s9  }
  0x36   : > { %p3790_p3 = scmp.ge.s32.totalorder %s3057_s25, 1  ;;  %s3233_s4 = sadd.s32 4294967295, %s3057_s25  }
  0x37   : > { %s2396_s6 = sadd.s32 4294967294, %s3057_s25   ;;  %s3840_s26 = smov (%p3166_p1, %s37_s26), 0 }
  0x38   : > { %p3228_p4 = pnand %p3790_p3, %p232_p0  ;;  %3792 = sst [smem:[#allocation19_spill]] %s3840_s26 }
  0x39   : > { %s41_s28 = sadd.s32 1, %s3053_s24  ;;  %s50_s8 = sadd.s32 1, %s3037_s20 }
  0x3a   : > { %s3791_s29 = scalar_select %p3228_p4, 1, 0 }
  0x3b   : > { %s3842_s28 = smov (!%p3166_p1, %s41_s28), %s3053_s24  ;;  %p57_p7 = scmp.ne.s32.totalorder %s3037_s20, %s3033_s19 }
  0x3c   : > { %p63_p11 = scmp.ne.s32.totalorder %s3033_s19, %s3029_s18  ;;  %p43_p5 = scmp.ge.s32.totalorder %s3842_s28, 2 }
  0x3d   : > { %p64_p8 = scmp.eq.s32.totalorder %s3233_s4, 0  ;;  %p3793_p10 = scmp.eq.s32.totalorder %s3057_s25, 0 }
  0x3e   : > { %s74_s5 = ssub.s32 %s3049_s23, %s3840_s26  ;;  %s3844_s28 = smov (%p43_p5, %s3842_s28), 0 }
  0x3f   : > { %p3254_p12 = por %p3793_p10, %p57_p7  ;;  %3795 = sst [smem:[#allocation20_spill]] %s3844_s28 }
  0x40   : > { %p3262_p1 = por %p64_p8, %p63_p11  ;;  %p76_p13 = scmp.eq.s32.totalorder %s74_s5, 0 }
  0x41   : > { %s45_s18 = ssub.s32 %s3053_s24, %s3844_s28  ;;  %p3797_p2 = scmp.ne.s32.totalorder %s3021_s16, %s3017_s15 }
  0x42   : > { %s3796_s27 = scalar_select %p3262_p1, 1, 0 }
  0x43   : > { %p3271_p0 = por %p3797_p2, %p64_p8  ;;  %p48_p3 = scmp.eq.s32.totalorder %s45_s18, 0 }
  0x44   : > { %s129_s9 = sor.u32 %s74_s5, %s45_s18  ;;  %s3799_s1 = sadd.s32 1, %s3025_s17 }
  0x45   : > { %s3798_s7 = scalar_select %p3271_p0, 1, 0 }
  0x46   : > { %s3278_s26 = scalar_select %p76_p13, %s3025_s17, %s3799_s1  }
  0x47   : > { %s3281_s3 = scalar_select %p48_p3, %s3037_s20, %s50_s8  }
  0x48   : > { %3800 = sst [smem:[#allocation21_spill]] %s3278_s26  ;;  %p130_p7 = scmp.eq.s32.totalorder %s129_s9, 0 }
  0x49   : > { %3801 = sst [smem:[#allocation22_spill]] %s3281_s3  ;;  %s132_s21 = sadd.s32 1, %s3013_s14 }
  0x4a   : > { %p142_p11 = scmp.ne.s32.totalorder %s3013_s14, %s3009_s13  ;;  %p143_p5 = scmp.eq.s32.totalorder %s3233_s4, 5 }
  0x4b   : > { %s3288_s15 = scalar_select %p130_p7, %s3013_s14, %s132_s21  }
  0x4c   : > { %p3290_p8 = por %p143_p5, %p142_p11  ;;  %p148_p10 = scmp.ne.s32.totalorder %s3009_s13, %s3005_s12 }
  0x4d   : > { %3802 = sst [smem:[#allocation23_spill]] %s3288_s15  ;;  %p149_p2 = scmp.eq.s32.totalorder %s2396_s6, 5 }
  0x4e   : > { %s3803_s28 = scalar_select %p3290_p8, 1, 0 }
  0x4f   : > { %s169_s5 = sand.u32 1, %s3037_s20   ;;  %p3297_p13 = por %p149_p2, %p148_p10 }
  0x50   : > { %s2399_s1 = sshll.u32 %s169_s5, 8  ;;  %s2532_s18 = sshll.u32 %s3053_s24, 12 }
  0x51   : > { %s3804_s8 = scalar_select %p3297_p13, 1, 0 }
  0x52   : > { %s173_s9 = scalar_lea.vmem [#allocation3], %s2399_s1  ;;  %s3806_s0 = sld [smem:[#allocation25_spill]] }
  0x53   : > { %3805 = sst [smem:[#allocation24_spill]] %s3804_s8  ;;  %s181_s3 = sshll.u32 %s173_s9, 4  ;;  %s3307_s3 = int_to_ptr.vmem [resolvable:$true] %s181_s3 }
  0x54   : > { %p3807_p3 = scmp.lt.s32.totalorder %s3057_s25, 6  ;;  %s3809_s24 = sand.u32 1, %s3025_s17  }
  0x55   : > { %s3319_s1 = sshll.u32 %s3809_s24, 1  ;;  %s3321_s22 = scalar_lea.sflag [#allocation4], %s169_s5 }
  0x56   : > { %p3313_p7 = pnand %p3807_p3, %p3254_p12 }
  0x58   : > { %s3305_s21 = scalar_lea.hbm %s3806_s0, %s2532_s18  ;;  %p2849_p5 = pneg %p3313_p7 }
  0x59   : > { %s2847_s26 = scalar_lea.hbm %s3305_s21, 4096  ;;  %s2852_s9 = scalar_lea.hbm %s3806_s0, 8192 }
  0x5a   : > { %p2848_p11 = scmp.ne.s32.totalorder %s3305_s21, %s2847_s26  ;;  %p2853_p12 = scmp.lt.u32.totalorder %s3305_s21, %s3806_s0 }
  0x5b   : > { %p2854_p3 = scmp.lt.u32.totalorder %s2852_s9, %s2847_s26  ;;  %p2856_p13 = scmp.lt.u32.totalorder %s2847_s26, %s3305_s21 }
  0x5c   : > { %p2850_p10 = pnand %p2849_p5, %p2848_p11 }
  0x5d   : > { %p2855_p9 = por %p2854_p3, %p2853_p12 }
  0x5e   : > { %p2851_p2 = pneg %p2850_p10 }
  0x5f   : > { %p2857_p8 = por %p2856_p13, %p2855_p9 }
  0x61   : > { %p2858_p0 = pnand %p2857_p8, %p2851_p2 }
  0x63   : > { %2861 = shalt.err (!%p2858_p0)
}
  0x64   : > { %s2862_s24 = scalar_lea.vmem %s3307_s3, 4096  ;;  %s3063_s5 = smov [#allocation3]  }
  0x65   : > { %p2863_p11 = scmp.ne.s32.totalorder %s3307_s3, %s2862_s24  ;;  %s2867_s10 = sshll.u32 %s3063_s5, 4  ;;  %s2868_s10 = int_to_ptr.vmem [resolvable:$false] %s2867_s10 }
  0x66   : > { %s2869_s17 = scalar_lea.vmem %s2868_s10, 8192  ;;  %p2870_p4 = scmp.lt.s32.totalorder %s3307_s3, %s2868_s10 }
  0x67   : > { %p2865_p10 = pnand %p2863_p11, %p2849_p5  ;;  %p2871_p12 = scmp.lt.s32.totalorder %s2869_s17, %s2862_s24 }
  0x69   : > { %p2866_p1 = pneg %p2865_p10  ;;  %p2872_p3 = por %p2871_p12, %p2870_p4 }
  0x6b   : > { %p2873_p9 = pnand %p2872_p3, %p2866_p1 }
  0x6d   : > { %2876 = shalt.err (!%p2873_p9)
}
  0x6e   : > { %s3064_s20 = smov 64   ;;  %s3065_s26 = smov 4  }
  0x6f   : > { %2627 = dma.hbm_to_vmem [thread:$0]  (!%p3313_p7), %s3305_s21, 4096, %s3307_s3, %s3321_s22, %s3064_s20, %s3064_s20, %s3065_s26  }
  0x70   : > { %s2534_s18 = sshll.u32 %s3049_s23, 5  ;;  %s219_s9 = scalar_lea.vmem [#allocation8], %s3319_s1 }
  0x71   : > { %s227_s5 = sshll.u32 %s219_s9, 4  ;;  %s225_s24 = scalar_lea.hbm %s3761_s2, %s2534_s18  ;;  %s228_s5 = int_to_ptr.vmem [resolvable:$true] %s227_s5 }
  0x72   : > { %s2877_s17 = scalar_lea.hbm %s225_s24, 32  ;;  %p3810_p1 = pneg %p3190_p6 }
  0x73   : > { %p2878_p4 = scmp.ne.s32.totalorder %s225_s24, %s2877_s17  ;;  %s2882_s8 = scalar_lea.hbm %s3761_s2, 96 }
  0x74   : > { %p2883_p13 = scmp.lt.u32.totalorder %s225_s24, %s3761_s2  ;;  %p2884_p7 = scmp.lt.u32.totalorder %s2882_s8, %s2877_s17 }
  0x75   : > { %p2880_p0 = pnand %p2878_p4, %p3810_p1  ;;  %p2886_p2 = scmp.lt.u32.totalorder %s2877_s17, %s225_s24 }
  0x76   : > { %p2885_p5 = por %p2884_p7, %p2883_p13 }
  0x77   : > { %p2881_p8 = pneg %p2880_p0 }
  0x78   : > { %p2887_p11 = por %p2886_p2, %p2885_p5 }
  0x7a   : > { %p2888_p10 = pnand %p2887_p11, %p2881_p8 }
  0x7c   : > { %2891 = shalt.err (!%p2888_p10)
}
  0x7d   : > { %s2892_s0 = scalar_lea.vmem %s228_s5, 32  ;;  %p3811_p3 = pmov %p3810_p1 }
  0x7e   : > { %p2893_p12 = scmp.ne.s32.totalorder %s228_s5, %s2892_s0  ;;  %s3066_s21 = smov [#allocation8]  }
  0x7f   : > { %s2897_s14 = sshll.u32 %s3066_s21, 4  ;;  %s2898_s14 = int_to_ptr.vmem [resolvable:$false] %s2897_s14 }
  0x80   : > { %p2895_p9 = pnand %p2893_p12, %p3811_p3  ;;  %s2899_s15 = scalar_lea.vmem %s2898_s14, 64 }
  0x81   : > { %p2900_p1 = scmp.lt.s32.totalorder %s228_s5, %s2898_s14  ;;  %p2901_p0 = scmp.lt.s32.totalorder %s2899_s15, %s2892_s0 }
  0x82   : > { %p2896_p4 = pneg %p2895_p9 }
  0x83   : > { %p2902_p7 = por %p2901_p0, %p2900_p1 }
  0x85   : > { %p2903_p13 = pnand %p2902_p7, %p2896_p4 }
  0x87   : > { %2906 = shalt.err (!%p2903_p13)
}
  0x88   : > { %2633 = dma.hbm_to_vmem [thread:$0]  (!%p3190_p6), %s225_s24, 32, %s228_s5, %s3197_s30  }
  0x89   : > { %p3812_p8 = scmp.ne.s32.totalorder %s3791_s29, 0 }
  0x8a   : > { %s238_s8 = sand.u32 (!%p3812_p8), 1, %s3033_s19   ;;  %p3813_p5 = scmp.ne.s32.totalorder (!%p3812_p8), %s3796_s27, 0 }
  0x8b   : > { %236 = sbr.rel (%p3812_p8) target bundleno = 541 (0x21d), region = 32  ;;  %s2409_s1 = sshll.u32 (!%p3812_p8), %s238_s8, 8 }
  0x8c   : > { %s239_s22 = scalar_lea.sflag (!%p3812_p8), [#allocation4], %s238_s8  ;;  %s3372_s20 = scalar_lea.vmem (!%p3812_p8), [#allocation3], %s2409_s1 }
  0x92   : > { %2992 = dma.done.wait (%p3813_p5), %s239_s22, 4096  }
  0x93   : > { %2994 = vsyncadd (%p3813_p5), %s239_s22, 4294963200  ;;  %s247_s30 = sand.u32 1, %s3233_s4   ;;  %s249_s11 = sand.u32 1, %s3021_s16  }
  0x94   : > { %s2410_s29 = sshll.u32 %s249_s11, 7  ;;  %s248_s26 = scalar_lea.sflag [#allocation7], %s247_s30 }
  0x95   : > { %s3382_s18 = scalar_lea.vmem [#allocation6], %s2410_s29  ;;  %p3814_p6 = scmp.ne.s32.totalorder %s3798_s7, 0 }
  0x97   : > { %2996 = dma.done.wait (%p3814_p6), %s248_s26, 2080  }
  0x98   : > { %2998 = vsyncadd (%p3814_p6), %s248_s26, 4294965216  ;;  %v3067_v0 = vmov 0   ;;  %v2761_v1 = vld [vmem:[%s3382_s18 + $0x4] ss:$8 sps:$4 sm:$0xff]   ;;  %v2763_v2 = vld [vmem:[%s3382_s18] ss:$8 sps:$4 sm:$0xff]   ;;  %v1654_v49 = vlaneseq }
  0x99   : > { %944 = vmatprep.mubr.bf16.mxu0 %v3067_v0  ;;  %1104 = vmatprep.mubr.bf16.mxu1 %v3067_v0  ;;  %v2764_v3 = vld [vmem:[%s3382_s18 + $0x14] ss:$8 sps:$4 sm:$0xff]   ;;  %v2766_v4 = vld [vmem:[%s3382_s18 + $0x10] ss:$8 sps:$4 sm:$0xff]   ;;  %v2767_v5 = vld [vmem:[%s3382_s18 + $0x24] ss:$8 sps:$4 sm:$0xff]  }
  0x9a   : > { %912 = vmatprep.subr.bf16.mxu0 %v2761_v1  ;;  %2599 = vmatprep.subr.bf16.mxu1 %v2761_v1  ;;  %v2769_v6 = vld [vmem:[%s3382_s18 + $0x20] ss:$8 sps:$4 sm:$0xff]   ;;  %v2770_v7 = vld [vmem:[%s3382_s18 + $0x34] ss:$8 sps:$4 sm:$0xff]   ;;  %v2772_v8 = vld [vmem:[%s3382_s18 + $0x30] ss:$8 sps:$4 sm:$0xff]  }
  0x9b   : > { %913 = vmatpush1.bf16.msra.mxu0 %v2763_v2  ;;  %2607 = vmatpush1.bf16.msra.mxu1 %v2763_v2  ;;  %v2773_v9 = vld [vmem:[%s3382_s18 + $0x44] ss:$8 sps:$4 sm:$0xff]   ;;  %v2775_v10 = vld [vmem:[%s3382_s18 + $0x40] ss:$8 sps:$4 sm:$0xff]   ;;  %v2776_v11 = vld [vmem:[%s3382_s18 + $0x54] ss:$8 sps:$4 sm:$0xff]  }
  0x9c   : > { %914 = vmatprep.subr.bf16.mxu0 %v2764_v3  ;;  %2600 = vmatprep.subr.bf16.mxu1 %v2764_v3  ;;  %v2778_v12 = vld [vmem:[%s3382_s18 + $0x50] ss:$8 sps:$4 sm:$0xff]   ;;  %v2779_v13 = vld [vmem:[%s3382_s18 + $0x64] ss:$8 sps:$4 sm:$0xff]   ;;  %v2781_v14 = vld [vmem:[%s3382_s18 + $0x60] ss:$8 sps:$4 sm:$0xff]  }
  0x9d   : > { %v2782_v15 = vld [vmem:[%s3382_s18 + $0x74] ss:$8 sps:$4 sm:$0xff]   ;;  %v2784_v16 = vld [vmem:[%s3382_s18 + $0x70] ss:$8 sps:$4 sm:$0xff]   ;;  %v2785_v17 = vld [vmem:[%s3372_s20] sm:$0xff]   ;;  %s2411_s4 = sshll.u32 %s249_s11, 1 }
  0x9e   : > { %v2786_v18 = vld [vmem:[%s3372_s20 + $0x80] sm:$0xff]   ;;  %v2787_v19 = vld [vmem:[%s3372_s20 + $0x8] sm:$0xff]   ;;  %v2789_v21 = vld [vmem:[%s3372_s20 + $0x10] sm:$0xff]   ;;  %v1655_v50 = vshrl.u32 %v1654_v49, 7  ;;  %s260_s27 = scalar_lea.vmem [#allocation8], %s2411_s4  ;;  %s290_s7 = sand.u32 1, %s3009_s13  }
  0x9f   : > { %915 = vmatpush1.bf16.msra.mxu0 %v2766_v4  ;;  %2608 = vmatpush1.bf16.msra.mxu1 %v2766_v4  ;;  %v2788_v20 = vld [vmem:[%s3372_s20 + $0x88] sm:$0xff]   ;;  %v2790_v22 = vld [vmem:[%s3372_s20 + $0x90] sm:$0xff]   ;;  %v2791_v23 = vld [vmem:[%s3372_s20 + $0x18] sm:$0xff]   ;;  %s2412_s9 = sshll.u32 %s290_s7, 9  ;;  %s3815_s10 = sld [smem:[#allocation17_spill]] }
  0xa0   : > { %916 = vmatprep.subr.bf16.mxu0 %v2767_v5  ;;  %2601 = vmatprep.subr.bf16.mxu1 %v2767_v5  ;;  %v2792_v24 = vld [vmem:[%s3372_s20 + $0x98] sm:$0xff]   ;;  %v2793_v25 = vld [vmem:[%s3372_s20 + $0x20] sm:$0xff]   ;;  %v2795_v27 = vld [vmem:[%s3372_s20 + $0x28] sm:$0xff]   ;;  %v1656_v51 = vsub.s32 0, %v1655_v50  ;;  %v1660_v53 = vsub.s32 1, %v1655_v50  ;;  %s3485_s5 = scalar_lea.vmem [#allocation9], %s2412_s9 }
  0xa1   : > { %v2794_v26 = vld [vmem:[%s3372_s20 + $0xa0] sm:$0xff]   ;;  %v2796_v28 = vld [vmem:[%s3372_s20 + $0xa8] sm:$0xff]   ;;  %v2797_v29 = vld [vmem:[%s3372_s20 + $0x30] sm:$0xff]   ;;  %s3816_s24 = sld [smem:[#allocation16_spill]]  ;;  %s2257_s21 = sshll.u32 %s3485_s5, 4  ;;  %s3675_s21 = int_to_ptr.vmem [resolvable:$true] %s2257_s21 }
  0xa2   : > { %v2798_v30 = vld [vmem:[%s3372_s20 + $0xb0] sm:$0xff]   ;;  %v2799_v31 = vld [vmem:[%s3372_s20 + $0x38] sm:$0xff]   ;;  %v2801_v33 = vld [vmem:[%s3372_s20 + $0x40] sm:$0xff]   ;;  %s3817_s8 = sld [smem:[#allocation27_spill]]  ;;  %s3683_s22 = scalar_lea.sflag [#allocation5], %s290_s7 }
  0xa3   : > { %917 = vmatpush1.bf16.msra.mxu0 %v2769_v6  ;;  %2609 = vmatpush1.bf16.msra.mxu1 %v2769_v6  ;;  %v2800_v32 = vld [vmem:[%s3372_s20 + $0xb8] sm:$0xff]   ;;  %v2802_v34 = vld [vmem:[%s3372_s20 + $0xc0] sm:$0xff]   ;;  %v2803_v35 = vld [vmem:[%s3372_s20 + $0x48] sm:$0xff]   ;;  %p3818_p11 = scmp.ne.s32.totalorder %s3803_s28, 0  ;;  %s3068_s30 = smov [#allocation9]  }
  0xa4   : > { %918 = vmatprep.subr.bf16.mxu0 %v2770_v7  ;;  %2602 = vmatprep.subr.bf16.mxu1 %v2770_v7  ;;  %v2804_v36 = vld [vmem:[%s3372_s20 + $0xc8] sm:$0xff]   ;;  %v2805_v37 = vld [vmem:[%s3372_s20 + $0x50] sm:$0xff]   ;;  %v2807_v39 = vld [vmem:[%s3372_s20 + $0x58] sm:$0xff]   ;;  %s2911_s11 = sshll.u32 %s3068_s30, 4  ;;  %s2912_s11 = int_to_ptr.vmem [resolvable:$false] %s2911_s11 }
  0xa5   : > { %v2806_v38 = vld [vmem:[%s3372_s20 + $0xd0] sm:$0xff]   ;;  %v2808_v40 = vld [vmem:[%s3372_s20 + $0xd8] sm:$0xff]   ;;  %v2809_v41 = vld [vmem:[%s3372_s20 + $0x60] sm:$0xff]   ;;  %s2615_s17 = smul.u32 384, %s3815_s10  ;;  %s2913_s29 = scalar_lea.vmem %s2912_s11, 16384 }
  0xa6   : > { %v2810_v42 = vld [vmem:[%s3372_s20 + $0xe0] sm:$0xff]   ;;  %v2811_v43 = vld [vmem:[%s3372_s20 + $0x68] sm:$0xff]   ;;  %v2813_v45 = vld [vmem:[%s3372_s20 + $0x70] sm:$0xff]   ;;  %p2914_p3 = scmp.lt.s32.totalorder %s3675_s21, %s2912_s11 }
  0xa7   : > { %919 = vmatpush1.bf16.msra.mxu0 %v2772_v8  ;;  %2610 = vmatpush1.bf16.msra.mxu1 %v2772_v8  ;;  %v2812_v44 = vld [vmem:[%s3372_s20 + $0xe8] sm:$0xff]   ;;  %v2814_v46 = vld [vmem:[%s3372_s20 + $0xf0] sm:$0xff]   ;;  %v2815_v47 = vld [vmem:[%s3372_s20 + $0x78] sm:$0xff]   ;;  %s2527_s6 = sshll.u32 %s3816_s24, 1 }
  0xa8   : > { %920 = vmatprep.subr.bf16.mxu0 %v2773_v9  ;;  %2603 = vmatprep.subr.bf16.mxu1 %v2773_v9  ;;  %v2816_v48 = vld [vmem:[%s3372_s20 + $0xf8] sm:$0xff]   ;;  %v1652_v52 = vld [vmem:[%s260_s27] sm:$0x3]  ;;  %s2254_s3 = sadd.s32 %s2615_s17, %s2527_s6  ;;  %s2907_s20 = scalar_lea.vmem %s3675_s21, 8192 }
  0xa9   : > { %v3470_v54 = vrot.slane %v1652_v52, %v1656_v51  ;;  %v3473_v55 = vrot.slane %v1652_v52, %v1660_v53  ;;  %s2529_s0 = sshll.u32 %s2254_s3, 6  ;;  %p2908_p2 = scmp.ne.s32.totalorder %s3675_s21, %s2907_s20 }
  0xaa   : > { %s3673_s1 = scalar_lea.hbm %s3817_s8, %s2529_s0  ;;  %p2915_p9 = scmp.lt.s32.totalorder %s2913_s29, %s2907_s20 }
  0xab   : > { %921 = vmatpush1.bf16.msra.mxu0 %v2775_v10  ;;  %2611 = vmatpush1.bf16.msra.mxu1 %v2775_v10  ;;  %p2909_p10 = pnand %p2908_p2, %p3818_p11 }
  0xac   : > { %922 = vmatprep.subr.bf16.mxu0 %v2776_v11  ;;  %2604 = vmatprep.subr.bf16.mxu1 %v2776_v11  ;;  %p2916_p4 = por %p2915_p9, %p2914_p3 }
  0xad   : > { %p2910_p12 = pneg %p2909_p10 }
  0xaf   : > { %923 = vmatpush1.bf16.msra.mxu0 %v2778_v12  ;;  %2612 = vmatpush1.bf16.msra.mxu1 %v2778_v12  ;;  %p2917_p1 = pnand %p2916_p4, %p2910_p12 }
  0xb0   : > { %924 = vmatprep.subr.bf16.mxu0 %v2779_v13  ;;  %2605 = vmatprep.subr.bf16.mxu1 %v2779_v13 }
  0xb3   : > { %925 = vmatpush1.bf16.msra.mxu0 %v2781_v14  ;;  %2613 = vmatpush1.bf16.msra.mxu1 %v2781_v14 }
  0xb4   : > { %926 = vmatprep.subr.bf16.mxu0 %v2782_v15  ;;  %2606 = vmatprep.subr.bf16.mxu1 %v2782_v15 }
  0xb7   : > { %927 = vmatpush1.bf16.msra.mxu0 %v2784_v16  ;;  %2614 = vmatpush1.bf16.msra.mxu1 %v2784_v16 }
  0xba   : > { %945 = vmatmul.mubr.bf16.vlgmr.msra.gmra.mrb[0].mxu0 %v2785_v17  ;;  %1105 = vmatmul.mubr.bf16.vlgmr.msra.gmra.mrb[0].mxu1 %v2786_v18 }
  0xbb   : > { %954 = vmatprep.mubr.bf16.mxu0 %v3067_v0  ;;  %1114 = vmatprep.mubr.bf16.mxu1 %v3067_v0 }
  0xc2   : > { %955 = vmatmul.mubr.bf16.gmra.mrb[4].mxu0 %v2787_v19  ;;  %1115 = vmatmul.mubr.bf16.gmra.mrb[4].mxu1 %v2788_v20 }
  0xc3   : > { %964 = vmatprep.mubr.bf16.mxu0 %v3067_v0  ;;  %1124 = vmatprep.mubr.bf16.mxu1 %v3067_v0 }
  0xca   : > { %965 = vmatmul.mubr.bf16.gmra.mrb[8].mxu0 %v2789_v21  ;;  %1125 = vmatmul.mubr.bf16.gmra.mrb[8].mxu1 %v2790_v22 }
  0xcb   : > { %974 = vmatprep.mubr.bf16.mxu0 %v3067_v0  ;;  %1134 = vmatprep.mubr.bf16.mxu1 %v3067_v0 }
  0xd2   : > { %975 = vmatmul.mubr.bf16.gmra.mrb[12].mxu0 %v2791_v23  ;;  %1135 = vmatmul.mubr.bf16.gmra.mrb[12].mxu1 %v2792_v24 }
  0xd3   : > { %984 = vmatprep.mubr.bf16.mxu0 %v3067_v0  ;;  %1144 = vmatprep.mubr.bf16.mxu1 %v3067_v0 }
  0xda   : > { %985 = vmatmul.mubr.bf16.gmra.mrb[16].mxu0 %v2793_v25  ;;  %1145 = vmatmul.mubr.bf16.gmra.mrb[16].mxu1 %v2794_v26 }
  0xdb   : > { %994 = vmatprep.mubr.bf16.mxu0 %v3067_v0  ;;  %1154 = vmatprep.mubr.bf16.mxu1 %v3067_v0 }
  0xe2   : > { %995 = vmatmul.mubr.bf16.gmra.mrb[20].mxu0 %v2795_v27  ;;  %1155 = vmatmul.mubr.bf16.gmra.mrb[20].mxu1 %v2796_v28 }
  0xe3   : > { %1004 = vmatprep.mubr.bf16.mxu0 %v3067_v0  ;;  %1164 = vmatprep.mubr.bf16.mxu1 %v3067_v0 }
  0xea   : > { %1005 = vmatmul.mubr.bf16.gmra.mrb[24].mxu0 %v2797_v29  ;;  %1165 = vmatmul.mubr.bf16.gmra.mrb[24].mxu1 %v2798_v30 }
  0xeb   : > { %1014 = vmatprep.mubr.bf16.mxu0 %v3067_v0  ;;  %1174 = vmatprep.mubr.bf16.mxu1 %v3067_v0 }
  0xf2   : > { %1015 = vmatmul.mubr.bf16.gmra.mrb[28].mxu0 %v2799_v31  ;;  %1175 = vmatmul.mubr.bf16.gmra.mrb[28].mxu1 %v2800_v32 }
  0xf3   : > { %1024 = vmatprep.mubr.bf16.mxu0 %v3067_v0  ;;  %1184 = vmatprep.mubr.bf16.mxu1 %v3067_v0 }
  0xfa   : > { %1025 = vmatmul.mubr.bf16.gmra.mrb[32].mxu0 %v2801_v33  ;;  %1185 = vmatmul.mubr.bf16.gmra.mrb[32].mxu1 %v2802_v34 }
  0xfb   : > { %1034 = vmatprep.mubr.bf16.mxu0 %v3067_v0  ;;  %1194 = vmatprep.mubr.bf16.mxu1 %v3067_v0 }
 0x102   : > { %1035 = vmatmul.mubr.bf16.gmra.mrb[36].mxu0 %v2803_v35  ;;  %1195 = vmatmul.mubr.bf16.gmra.mrb[36].mxu1 %v2804_v36 }
 0x103   : > { %1044 = vmatprep.mubr.bf16.mxu0 %v3067_v0  ;;  %1204 = vmatprep.mubr.bf16.mxu1 %v3067_v0 }
 0x10a   : > { %1045 = vmatmul.mubr.bf16.gmra.mrb[40].mxu0 %v2805_v37  ;;  %1205 = vmatmul.mubr.bf16.gmra.mrb[40].mxu1 %v2806_v38 }
 0x10b   : > { %1054 = vmatprep.mubr.bf16.mxu0 %v3067_v0  ;;  %1214 = vmatprep.mubr.bf16.mxu1 %v3067_v0 }
 0x112   : > { %1055 = vmatmul.mubr.bf16.gmra.mrb[44].mxu0 %v2807_v39  ;;  %1215 = vmatmul.mubr.bf16.gmra.mrb[44].mxu1 %v2808_v40 }
 0x113   : > { %1064 = vmatprep.mubr.bf16.mxu0 %v3067_v0  ;;  %1224 = vmatprep.mubr.bf16.mxu1 %v3067_v0 }
 0x11a   : > { %1065 = vmatmul.mubr.bf16.gmra.mrb[48].mxu0 %v2809_v41  ;;  %1225 = vmatmul.mubr.bf16.gmra.mrb[48].mxu1 %v2810_v42 }
 0x11b   : > { %1074 = vmatprep.mubr.bf16.mxu0 %v3067_v0  ;;  %1234 = vmatprep.mubr.bf16.mxu1 %v3067_v0 }
 0x122   : > { %1075 = vmatmul.mubr.bf16.gmra.mrb[52].mxu0 %v2811_v43  ;;  %1235 = vmatmul.mubr.bf16.gmra.mrb[52].mxu1 %v2812_v44 }
 0x123   : > { %1084 = vmatprep.mubr.bf16.mxu0 %v3067_v0  ;;  %1244 = vmatprep.mubr.bf16.mxu1 %v3067_v0 }
 0x12a   : > { %1085 = vmatmul.mubr.bf16.gmra.mrb[56].mxu0 %v2813_v45  ;;  %1245 = vmatmul.mubr.bf16.gmra.mrb[56].mxu1 %v2814_v46 }
 0x12b   : > { %1094 = vmatprep.mubr.bf16.mxu0 %v3067_v0  ;;  %1254 = vmatprep.mubr.bf16.mxu1 %v3067_v0 }
 0x132   : > { %1095 = vmatmul.mubr.bf16.gmra.mrb[60].mxu0 %v2815_v47  ;;  %1255 = vmatmul.mubr.bf16.gmra.mrb[60].mxu1 %v2816_v48 }
 0x18d   : > { %v946_v56 = vpop.f32.mrb[0].mxu0  ;;  %v1106_v57 = vpop.f32.mrb[0].mxu1 }
 0x18e   : > { %v1664_v58 = vadd.f32 %v3470_v54, %v946_v56  ;;  %v1728_v59 = vadd.f32 %v3470_v54, %v1106_v57  ;;  %v948_v60 = vpop.f32.mrb[1].mxu0  ;;  %v1108_v61 = vpop.f32.mrb[1].mxu1 }
 0x18f   : > { %v1665_v62 = vadd.f32 %v3473_v55, %v948_v60  ;;  %v1729_v63 = vadd.f32 %v3473_v55, %v1108_v61  ;;  %v950_v0 = vpop.f32.mrb[2].mxu0  ;;  %v1110_v1 = vpop.f32.mrb[2].mxu1 }
 0x190   : > { %v1666_v2 = vadd.f32 %v3470_v54, %v950_v0  ;;  %v1730_v3 = vadd.f32 %v3470_v54, %v1110_v1  ;;  %v952_v4 = vpop.f32.mrb[3].mxu0  ;;  %v1112_v5 = vpop.f32.mrb[3].mxu1 }
 0x191   : > { %v2535_v6 = vpack.c.bf16 %v1665_v62, %v1664_v58  ;;  %v2567_v7 = vpack.c.bf16 %v1729_v63, %v1728_v59  ;;  %v1667_v8 = vadd.f32 %v3473_v55, %v952_v4  ;;  %v1731_v9 = vadd.f32 %v3473_v55, %v1112_v5 }
 0x193   : > { %2176 = vst [vmem:[%s3485_s5] sm:$0xff] %v2535_v6  ;;  %2208 = vst [vmem:[%s3485_s5 + $0x100] sm:$0xff] %v2567_v7  ;;  %v2536_v10 = vpack.c.bf16 %v1667_v8, %v1666_v2  ;;  %v2568_v11 = vpack.c.bf16 %v1731_v9, %v1730_v3 }
 0x195   : > { %2177 = vst [vmem:[%s3485_s5 + $0x8] sm:$0xff] %v2536_v10  ;;  %2209 = vst [vmem:[%s3485_s5 + $0x108] sm:$0xff] %v2568_v11  ;;  %v956_v12 = vpop.f32.mrb[4].mxu0  ;;  %v1116_v13 = vpop.f32.mrb[4].mxu1 }
 0x196   : > { %v1668_v14 = vadd.f32 %v3470_v54, %v956_v12  ;;  %v1732_v15 = vadd.f32 %v3470_v54, %v1116_v13  ;;  %v958_v16 = vpop.f32.mrb[5].mxu0  ;;  %v1118_v17 = vpop.f32.mrb[5].mxu1 }
 0x197   : > { %v1669_v18 = vadd.f32 %v3473_v55, %v958_v16  ;;  %v1733_v19 = vadd.f32 %v3473_v55, %v1118_v17  ;;  %v960_v20 = vpop.f32.mrb[6].mxu0  ;;  %v1120_v21 = vpop.f32.mrb[6].mxu1 }
 0x198   : > { %v1670_v22 = vadd.f32 %v3470_v54, %v960_v20  ;;  %v1734_v23 = vadd.f32 %v3470_v54, %v1120_v21  ;;  %v962_v24 = vpop.f32.mrb[7].mxu0  ;;  %v1122_v25 = vpop.f32.mrb[7].mxu1 }
 0x199   : > { %v2537_v26 = vpack.c.bf16 %v1669_v18, %v1668_v14  ;;  %v2569_v27 = vpack.c.bf16 %v1733_v19, %v1732_v15  ;;  %v1671_v28 = vadd.f32 %v3473_v55, %v962_v24  ;;  %v1735_v29 = vadd.f32 %v3473_v55, %v1122_v25 }
 0x19b   : > { %2178 = vst [vmem:[%s3485_s5 + $0x10] sm:$0xff] %v2537_v26  ;;  %2210 = vst [vmem:[%s3485_s5 + $0x110] sm:$0xff] %v2569_v27  ;;  %v2538_v30 = vpack.c.bf16 %v1671_v28, %v1670_v22  ;;  %v2570_v31 = vpack.c.bf16 %v1735_v29, %v1734_v23 }
 0x19d   : > { %2179 = vst [vmem:[%s3485_s5 + $0x18] sm:$0xff] %v2538_v30  ;;  %2211 = vst [vmem:[%s3485_s5 + $0x118] sm:$0xff] %v2570_v31  ;;  %v966_v32 = vpop.f32.mrb[8].mxu0  ;;  %v1126_v33 = vpop.f32.mrb[8].mxu1 }
 0x19e   : > { %v1672_v34 = vadd.f32 %v3470_v54, %v966_v32  ;;  %v1736_v35 = vadd.f32 %v3470_v54, %v1126_v33  ;;  %v968_v36 = vpop.f32.mrb[9].mxu0  ;;  %v1128_v37 = vpop.f32.mrb[9].mxu1 }
 0x19f   : > { %v1673_v38 = vadd.f32 %v3473_v55, %v968_v36  ;;  %v1737_v39 = vadd.f32 %v3473_v55, %v1128_v37  ;;  %v970_v40 = vpop.f32.mrb[10].mxu0  ;;  %v1130_v41 = vpop.f32.mrb[10].mxu1 }
 0x1a0   : > { %v1674_v42 = vadd.f32 %v3470_v54, %v970_v40  ;;  %v1738_v43 = vadd.f32 %v3470_v54, %v1130_v41  ;;  %v972_v44 = vpop.f32.mrb[11].mxu0  ;;  %v1132_v45 = vpop.f32.mrb[11].mxu1 }
 0x1a1   : > { %v2539_v46 = vpack.c.bf16 %v1673_v38, %v1672_v34  ;;  %v2571_v47 = vpack.c.bf16 %v1737_v39, %v1736_v35  ;;  %v1675_v48 = vadd.f32 %v3473_v55, %v972_v44  ;;  %v1739_v49 = vadd.f32 %v3473_v55, %v1132_v45 }
 0x1a3   : > { %2180 = vst [vmem:[%s3485_s5 + $0x20] sm:$0xff] %v2539_v46  ;;  %2212 = vst [vmem:[%s3485_s5 + $0x120] sm:$0xff] %v2571_v47  ;;  %v2540_v50 = vpack.c.bf16 %v1675_v48, %v1674_v42  ;;  %v2572_v51 = vpack.c.bf16 %v1739_v49, %v1738_v43 }
 0x1a5   : > { %2181 = vst [vmem:[%s3485_s5 + $0x28] sm:$0xff] %v2540_v50  ;;  %2213 = vst [vmem:[%s3485_s5 + $0x128] sm:$0xff] %v2572_v51  ;;  %v976_v52 = vpop.f32.mrb[12].mxu0  ;;  %v1136_v53 = vpop.f32.mrb[12].mxu1 }
 0x1a6   : > { %v1676_v56 = vadd.f32 %v3470_v54, %v976_v52  ;;  %v1740_v57 = vadd.f32 %v3470_v54, %v1136_v53  ;;  %v978_v58 = vpop.f32.mrb[13].mxu0  ;;  %v1138_v59 = vpop.f32.mrb[13].mxu1 }
 0x1a7   : > { %v1677_v60 = vadd.f32 %v3473_v55, %v978_v58  ;;  %v1741_v61 = vadd.f32 %v3473_v55, %v1138_v59  ;;  %v980_v62 = vpop.f32.mrb[14].mxu0  ;;  %v1140_v63 = vpop.f32.mrb[14].mxu1 }
 0x1a8   : > { %v1678_v0 = vadd.f32 %v3470_v54, %v980_v62  ;;  %v1742_v1 = vadd.f32 %v3470_v54, %v1140_v63  ;;  %v982_v2 = vpop.f32.mrb[15].mxu0  ;;  %v1142_v3 = vpop.f32.mrb[15].mxu1 }
 0x1a9   : > { %v2541_v4 = vpack.c.bf16 %v1677_v60, %v1676_v56  ;;  %v2573_v5 = vpack.c.bf16 %v1741_v61, %v1740_v57  ;;  %v1679_v6 = vadd.f32 %v3473_v55, %v982_v2  ;;  %v1743_v7 = vadd.f32 %v3473_v55, %v1142_v3 }
 0x1ab   : > { %2182 = vst [vmem:[%s3485_s5 + $0x30] sm:$0xff] %v2541_v4  ;;  %2214 = vst [vmem:[%s3485_s5 + $0x130] sm:$0xff] %v2573_v5  ;;  %v2542_v8 = vpack.c.bf16 %v1679_v6, %v1678_v0  ;;  %v2574_v9 = vpack.c.bf16 %v1743_v7, %v1742_v1 }
 0x1ad   : > { %2183 = vst [vmem:[%s3485_s5 + $0x38] sm:$0xff] %v2542_v8  ;;  %2215 = vst [vmem:[%s3485_s5 + $0x138] sm:$0xff] %v2574_v9  ;;  %v986_v10 = vpop.f32.mrb[16].mxu0  ;;  %v1146_v11 = vpop.f32.mrb[16].mxu1 }
 0x1ae   : > { %v1680_v12 = vadd.f32 %v3470_v54, %v986_v10  ;;  %v1744_v13 = vadd.f32 %v3470_v54, %v1146_v11  ;;  %v988_v14 = vpop.f32.mrb[17].mxu0  ;;  %v1148_v15 = vpop.f32.mrb[17].mxu1 }
 0x1af   : > { %v1681_v16 = vadd.f32 %v3473_v55, %v988_v14  ;;  %v1745_v17 = vadd.f32 %v3473_v55, %v1148_v15  ;;  %v990_v18 = vpop.f32.mrb[18].mxu0  ;;  %v1150_v19 = vpop.f32.mrb[18].mxu1 }
 0x1b0   : > { %v1682_v20 = vadd.f32 %v3470_v54, %v990_v18  ;;  %v1746_v21 = vadd.f32 %v3470_v54, %v1150_v19  ;;  %v992_v22 = vpop.f32.mrb[19].mxu0  ;;  %v1152_v23 = vpop.f32.mrb[19].mxu1 }
 0x1b1   : > { %v2543_v24 = vpack.c.bf16 %v1681_v16, %v1680_v12  ;;  %v2575_v25 = vpack.c.bf16 %v1745_v17, %v1744_v13  ;;  %v1683_v26 = vadd.f32 %v3473_v55, %v992_v22  ;;  %v1747_v27 = vadd.f32 %v3473_v55, %v1152_v23 }
 0x1b3   : > { %2184 = vst [vmem:[%s3485_s5 + $0x40] sm:$0xff] %v2543_v24  ;;  %2216 = vst [vmem:[%s3485_s5 + $0x140] sm:$0xff] %v2575_v25  ;;  %v2544_v28 = vpack.c.bf16 %v1683_v26, %v1682_v20  ;;  %v2576_v29 = vpack.c.bf16 %v1747_v27, %v1746_v21 }
 0x1b5   : > { %2185 = vst [vmem:[%s3485_s5 + $0x48] sm:$0xff] %v2544_v28  ;;  %2217 = vst [vmem:[%s3485_s5 + $0x148] sm:$0xff] %v2576_v29  ;;  %v996_v30 = vpop.f32.mrb[20].mxu0  ;;  %v1156_v31 = vpop.f32.mrb[20].mxu1 }
 0x1b6   : > { %v1684_v32 = vadd.f32 %v3470_v54, %v996_v30  ;;  %v1748_v33 = vadd.f32 %v3470_v54, %v1156_v31  ;;  %v998_v34 = vpop.f32.mrb[21].mxu0  ;;  %v1158_v35 = vpop.f32.mrb[21].mxu1 }
 0x1b7   : > { %v1685_v36 = vadd.f32 %v3473_v55, %v998_v34  ;;  %v1749_v37 = vadd.f32 %v3473_v55, %v1158_v35  ;;  %v1000_v38 = vpop.f32.mrb[22].mxu0  ;;  %v1160_v39 = vpop.f32.mrb[22].mxu1 }
 0x1b8   : > { %v1686_v40 = vadd.f32 %v3470_v54, %v1000_v38  ;;  %v1750_v41 = vadd.f32 %v3470_v54, %v1160_v39  ;;  %v1002_v42 = vpop.f32.mrb[23].mxu0  ;;  %v1162_v43 = vpop.f32.mrb[23].mxu1 }
 0x1b9   : > { %v2545_v44 = vpack.c.bf16 %v1685_v36, %v1684_v32  ;;  %v2577_v45 = vpack.c.bf16 %v1749_v37, %v1748_v33  ;;  %v1687_v46 = vadd.f32 %v3473_v55, %v1002_v42  ;;  %v1751_v47 = vadd.f32 %v3473_v55, %v1162_v43 }
 0x1bb   : > { %2186 = vst [vmem:[%s3485_s5 + $0x50] sm:$0xff] %v2545_v44  ;;  %2218 = vst [vmem:[%s3485_s5 + $0x150] sm:$0xff] %v2577_v45  ;;  %v2546_v48 = vpack.c.bf16 %v1687_v46, %v1686_v40  ;;  %v2578_v49 = vpack.c.bf16 %v1751_v47, %v1750_v41 }
 0x1bd   : > { %2187 = vst [vmem:[%s3485_s5 + $0x58] sm:$0xff] %v2546_v48  ;;  %2219 = vst [vmem:[%s3485_s5 + $0x158] sm:$0xff] %v2578_v49  ;;  %v1006_v50 = vpop.f32.mrb[24].mxu0  ;;  %v1166_v51 = vpop.f32.mrb[24].mxu1 }
 0x1be   : > { %v1688_v52 = vadd.f32 %v3470_v54, %v1006_v50  ;;  %v1752_v53 = vadd.f32 %v3470_v54, %v1166_v51  ;;  %v1008_v56 = vpop.f32.mrb[25].mxu0  ;;  %v1168_v57 = vpop.f32.mrb[25].mxu1 }
 0x1bf   : > { %v1689_v58 = vadd.f32 %v3473_v55, %v1008_v56  ;;  %v1753_v59 = vadd.f32 %v3473_v55, %v1168_v57  ;;  %v1010_v60 = vpop.f32.mrb[26].mxu0  ;;  %v1170_v61 = vpop.f32.mrb[26].mxu1 }
 0x1c0   : > { %v1690_v62 = vadd.f32 %v3470_v54, %v1010_v60  ;;  %v1754_v63 = vadd.f32 %v3470_v54, %v1170_v61  ;;  %v1012_v0 = vpop.f32.mrb[27].mxu0  ;;  %v1172_v1 = vpop.f32.mrb[27].mxu1 }
 0x1c1   : > { %v2547_v2 = vpack.c.bf16 %v1689_v58, %v1688_v52  ;;  %v2579_v3 = vpack.c.bf16 %v1753_v59, %v1752_v53  ;;  %v1691_v4 = vadd.f32 %v3473_v55, %v1012_v0  ;;  %v1755_v5 = vadd.f32 %v3473_v55, %v1172_v1 }
 0x1c3   : > { %2188 = vst [vmem:[%s3485_s5 + $0x60] sm:$0xff] %v2547_v2  ;;  %2220 = vst [vmem:[%s3485_s5 + $0x160] sm:$0xff] %v2579_v3  ;;  %v2548_v6 = vpack.c.bf16 %v1691_v4, %v1690_v62  ;;  %v2580_v7 = vpack.c.bf16 %v1755_v5, %v1754_v63 }
 0x1c5   : > { %2189 = vst [vmem:[%s3485_s5 + $0x68] sm:$0xff] %v2548_v6  ;;  %2221 = vst [vmem:[%s3485_s5 + $0x168] sm:$0xff] %v2580_v7  ;;  %v1016_v8 = vpop.f32.mrb[28].mxu0  ;;  %v1176_v9 = vpop.f32.mrb[28].mxu1 }
 0x1c6   : > { %v1692_v10 = vadd.f32 %v3470_v54, %v1016_v8  ;;  %v1756_v11 = vadd.f32 %v3470_v54, %v1176_v9  ;;  %v1018_v12 = vpop.f32.mrb[29].mxu0  ;;  %v1178_v13 = vpop.f32.mrb[29].mxu1 }
 0x1c7   : > { %v1693_v14 = vadd.f32 %v3473_v55, %v1018_v12  ;;  %v1757_v15 = vadd.f32 %v3473_v55, %v1178_v13  ;;  %v1020_v16 = vpop.f32.mrb[30].mxu0  ;;  %v1180_v17 = vpop.f32.mrb[30].mxu1 }
 0x1c8   : > { %v1694_v18 = vadd.f32 %v3470_v54, %v1020_v16  ;;  %v1758_v19 = vadd.f32 %v3470_v54, %v1180_v17  ;;  %v1022_v20 = vpop.f32.mrb[31].mxu0  ;;  %v1182_v21 = vpop.f32.mrb[31].mxu1 }
 0x1c9   : > { %v2549_v22 = vpack.c.bf16 %v1693_v14, %v1692_v10  ;;  %v2581_v23 = vpack.c.bf16 %v1757_v15, %v1756_v11  ;;  %v1695_v24 = vadd.f32 %v3473_v55, %v1022_v20  ;;  %v1759_v25 = vadd.f32 %v3473_v55, %v1182_v21 }
 0x1cb   : > { %2190 = vst [vmem:[%s3485_s5 + $0x70] sm:$0xff] %v2549_v22  ;;  %2222 = vst [vmem:[%s3485_s5 + $0x170] sm:$0xff] %v2581_v23  ;;  %v2550_v26 = vpack.c.bf16 %v1695_v24, %v1694_v18  ;;  %v2582_v27 = vpack.c.bf16 %v1759_v25, %v1758_v19 }
 0x1cd   : > { %2191 = vst [vmem:[%s3485_s5 + $0x78] sm:$0xff] %v2550_v26  ;;  %2223 = vst [vmem:[%s3485_s5 + $0x178] sm:$0xff] %v2582_v27  ;;  %v1026_v28 = vpop.f32.mrb[32].mxu0  ;;  %v1186_v29 = vpop.f32.mrb[32].mxu1 }
 0x1ce   : > { %v1696_v30 = vadd.f32 %v3470_v54, %v1026_v28  ;;  %v1760_v31 = vadd.f32 %v3470_v54, %v1186_v29  ;;  %v1028_v32 = vpop.f32.mrb[33].mxu0  ;;  %v1188_v33 = vpop.f32.mrb[33].mxu1 }
 0x1cf   : > { %v1697_v34 = vadd.f32 %v3473_v55, %v1028_v32  ;;  %v1761_v35 = vadd.f32 %v3473_v55, %v1188_v33  ;;  %v1030_v36 = vpop.f32.mrb[34].mxu0  ;;  %v1190_v37 = vpop.f32.mrb[34].mxu1 }
 0x1d0   : > { %v1698_v38 = vadd.f32 %v3470_v54, %v1030_v36  ;;  %v1762_v39 = vadd.f32 %v3470_v54, %v1190_v37  ;;  %v1032_v40 = vpop.f32.mrb[35].mxu0  ;;  %v1192_v41 = vpop.f32.mrb[35].mxu1 }
 0x1d1   : > { %v2551_v42 = vpack.c.bf16 %v1697_v34, %v1696_v30  ;;  %v2583_v43 = vpack.c.bf16 %v1761_v35, %v1760_v31  ;;  %v1699_v44 = vadd.f32 %v3473_v55, %v1032_v40  ;;  %v1763_v45 = vadd.f32 %v3473_v55, %v1192_v41 }
 0x1d3   : > { %2192 = vst [vmem:[%s3485_s5 + $0x80] sm:$0xff] %v2551_v42  ;;  %2224 = vst [vmem:[%s3485_s5 + $0x180] sm:$0xff] %v2583_v43  ;;  %v2552_v46 = vpack.c.bf16 %v1699_v44, %v1698_v38  ;;  %v2584_v47 = vpack.c.bf16 %v1763_v45, %v1762_v39 }
 0x1d5   : > { %2193 = vst [vmem:[%s3485_s5 + $0x88] sm:$0xff] %v2552_v46  ;;  %2225 = vst [vmem:[%s3485_s5 + $0x188] sm:$0xff] %v2584_v47  ;;  %v1036_v48 = vpop.f32.mrb[36].mxu0  ;;  %v1196_v49 = vpop.f32.mrb[36].mxu1 }
 0x1d6   : > { %v1700_v50 = vadd.f32 %v3470_v54, %v1036_v48  ;;  %v1764_v51 = vadd.f32 %v3470_v54, %v1196_v49  ;;  %v1038_v52 = vpop.f32.mrb[37].mxu0  ;;  %v1198_v53 = vpop.f32.mrb[37].mxu1 }
 0x1d7   : > { %v1701_v56 = vadd.f32 %v3473_v55, %v1038_v52  ;;  %v1765_v57 = vadd.f32 %v3473_v55, %v1198_v53  ;;  %v1040_v58 = vpop.f32.mrb[38].mxu0  ;;  %v1200_v59 = vpop.f32.mrb[38].mxu1 }
 0x1d8   : > { %v1702_v60 = vadd.f32 %v3470_v54, %v1040_v58  ;;  %v1766_v61 = vadd.f32 %v3470_v54, %v1200_v59  ;;  %v1042_v62 = vpop.f32.mrb[39].mxu0  ;;  %v1202_v63 = vpop.f32.mrb[39].mxu1 }
 0x1d9   : > { %v2553_v0 = vpack.c.bf16 %v1701_v56, %v1700_v50  ;;  %v2585_v1 = vpack.c.bf16 %v1765_v57, %v1764_v51  ;;  %v1703_v2 = vadd.f32 %v3473_v55, %v1042_v62  ;;  %v1767_v3 = vadd.f32 %v3473_v55, %v1202_v63 }
 0x1db   : > { %2194 = vst [vmem:[%s3485_s5 + $0x90] sm:$0xff] %v2553_v0  ;;  %2226 = vst [vmem:[%s3485_s5 + $0x190] sm:$0xff] %v2585_v1  ;;  %v2554_v4 = vpack.c.bf16 %v1703_v2, %v1702_v60  ;;  %v2586_v5 = vpack.c.bf16 %v1767_v3, %v1766_v61 }
 0x1dd   : > { %2195 = vst [vmem:[%s3485_s5 + $0x98] sm:$0xff] %v2554_v4  ;;  %2227 = vst [vmem:[%s3485_s5 + $0x198] sm:$0xff] %v2586_v5  ;;  %v1046_v6 = vpop.f32.mrb[40].mxu0  ;;  %v1206_v7 = vpop.f32.mrb[40].mxu1 }
 0x1de   : > { %v1704_v8 = vadd.f32 %v3470_v54, %v1046_v6  ;;  %v1768_v9 = vadd.f32 %v3470_v54, %v1206_v7  ;;  %v1048_v10 = vpop.f32.mrb[41].mxu0  ;;  %v1208_v11 = vpop.f32.mrb[41].mxu1 }
 0x1df   : > { %v1705_v12 = vadd.f32 %v3473_v55, %v1048_v10  ;;  %v1769_v13 = vadd.f32 %v3473_v55, %v1208_v11  ;;  %v1050_v14 = vpop.f32.mrb[42].mxu0  ;;  %v1210_v15 = vpop.f32.mrb[42].mxu1 }
 0x1e0   : > { %v1706_v16 = vadd.f32 %v3470_v54, %v1050_v14  ;;  %v1770_v17 = vadd.f32 %v3470_v54, %v1210_v15  ;;  %v1052_v18 = vpop.f32.mrb[43].mxu0  ;;  %v1212_v19 = vpop.f32.mrb[43].mxu1 }
 0x1e1   : > { %v2555_v20 = vpack.c.bf16 %v1705_v12, %v1704_v8  ;;  %v2587_v21 = vpack.c.bf16 %v1769_v13, %v1768_v9  ;;  %v1707_v22 = vadd.f32 %v3473_v55, %v1052_v18  ;;  %v1771_v23 = vadd.f32 %v3473_v55, %v1212_v19 }
 0x1e3   : > { %2196 = vst [vmem:[%s3485_s5 + $0xa0] sm:$0xff] %v2555_v20  ;;  %2228 = vst [vmem:[%s3485_s5 + $0x1a0] sm:$0xff] %v2587_v21  ;;  %v2556_v24 = vpack.c.bf16 %v1707_v22, %v1706_v16  ;;  %v2588_v25 = vpack.c.bf16 %v1771_v23, %v1770_v17 }
 0x1e5   : > { %2197 = vst [vmem:[%s3485_s5 + $0xa8] sm:$0xff] %v2556_v24  ;;  %2229 = vst [vmem:[%s3485_s5 + $0x1a8] sm:$0xff] %v2588_v25  ;;  %v1056_v26 = vpop.f32.mrb[44].mxu0  ;;  %v1216_v27 = vpop.f32.mrb[44].mxu1 }
 0x1e6   : > { %v1708_v28 = vadd.f32 %v3470_v54, %v1056_v26  ;;  %v1772_v29 = vadd.f32 %v3470_v54, %v1216_v27  ;;  %v1058_v30 = vpop.f32.mrb[45].mxu0  ;;  %v1218_v31 = vpop.f32.mrb[45].mxu1 }
 0x1e7   : > { %v1709_v32 = vadd.f32 %v3473_v55, %v1058_v30  ;;  %v1773_v33 = vadd.f32 %v3473_v55, %v1218_v31  ;;  %v1060_v34 = vpop.f32.mrb[46].mxu0  ;;  %v1220_v35 = vpop.f32.mrb[46].mxu1 }
 0x1e8   : > { %v1710_v36 = vadd.f32 %v3470_v54, %v1060_v34  ;;  %v1774_v37 = vadd.f32 %v3470_v54, %v1220_v35  ;;  %v1062_v38 = vpop.f32.mrb[47].mxu0  ;;  %v1222_v39 = vpop.f32.mrb[47].mxu1 }
 0x1e9   : > { %v2557_v40 = vpack.c.bf16 %v1709_v32, %v1708_v28  ;;  %v2589_v41 = vpack.c.bf16 %v1773_v33, %v1772_v29  ;;  %v1711_v42 = vadd.f32 %v3473_v55, %v1062_v38  ;;  %v1775_v43 = vadd.f32 %v3473_v55, %v1222_v39 }
 0x1eb   : > { %2198 = vst [vmem:[%s3485_s5 + $0xb0] sm:$0xff] %v2557_v40  ;;  %2230 = vst [vmem:[%s3485_s5 + $0x1b0] sm:$0xff] %v2589_v41  ;;  %v2558_v44 = vpack.c.bf16 %v1711_v42, %v1710_v36  ;;  %v2590_v45 = vpack.c.bf16 %v1775_v43, %v1774_v37 }
 0x1ed   : > { %2199 = vst [vmem:[%s3485_s5 + $0xb8] sm:$0xff] %v2558_v44  ;;  %2231 = vst [vmem:[%s3485_s5 + $0x1b8] sm:$0xff] %v2590_v45  ;;  %v1066_v46 = vpop.f32.mrb[48].mxu0  ;;  %v1226_v47 = vpop.f32.mrb[48].mxu1 }
 0x1ee   : > { %v1712_v48 = vadd.f32 %v3470_v54, %v1066_v46  ;;  %v1776_v49 = vadd.f32 %v3470_v54, %v1226_v47  ;;  %v1068_v50 = vpop.f32.mrb[49].mxu0  ;;  %v1228_v51 = vpop.f32.mrb[49].mxu1 }
 0x1ef   : > { %v1713_v52 = vadd.f32 %v3473_v55, %v1068_v50  ;;  %v1777_v53 = vadd.f32 %v3473_v55, %v1228_v51  ;;  %v1070_v56 = vpop.f32.mrb[50].mxu0  ;;  %v1230_v57 = vpop.f32.mrb[50].mxu1 }
 0x1f0   : > { %v1714_v58 = vadd.f32 %v3470_v54, %v1070_v56  ;;  %v1778_v59 = vadd.f32 %v3470_v54, %v1230_v57  ;;  %v1072_v60 = vpop.f32.mrb[51].mxu0  ;;  %v1232_v61 = vpop.f32.mrb[51].mxu1 }
 0x1f1   : > { %v2559_v62 = vpack.c.bf16 %v1713_v52, %v1712_v48  ;;  %v2591_v63 = vpack.c.bf16 %v1777_v53, %v1776_v49  ;;  %v1715_v0 = vadd.f32 %v3473_v55, %v1072_v60  ;;  %v1779_v1 = vadd.f32 %v3473_v55, %v1232_v61 }
 0x1f3   : > { %2200 = vst [vmem:[%s3485_s5 + $0xc0] sm:$0xff] %v2559_v62  ;;  %2232 = vst [vmem:[%s3485_s5 + $0x1c0] sm:$0xff] %v2591_v63  ;;  %v2560_v2 = vpack.c.bf16 %v1715_v0, %v1714_v58  ;;  %v2592_v3 = vpack.c.bf16 %v1779_v1, %v1778_v59 }
 0x1f5   : > { %2201 = vst [vmem:[%s3485_s5 + $0xc8] sm:$0xff] %v2560_v2  ;;  %2233 = vst [vmem:[%s3485_s5 + $0x1c8] sm:$0xff] %v2592_v3  ;;  %v1076_v4 = vpop.f32.mrb[52].mxu0  ;;  %v1236_v5 = vpop.f32.mrb[52].mxu1 }
 0x1f6   : > { %v1716_v6 = vadd.f32 %v3470_v54, %v1076_v4  ;;  %v1780_v7 = vadd.f32 %v3470_v54, %v1236_v5  ;;  %v1078_v8 = vpop.f32.mrb[53].mxu0  ;;  %v1238_v9 = vpop.f32.mrb[53].mxu1 }
 0x1f7   : > { %v1717_v10 = vadd.f32 %v3473_v55, %v1078_v8  ;;  %v1781_v11 = vadd.f32 %v3473_v55, %v1238_v9  ;;  %v1080_v12 = vpop.f32.mrb[54].mxu0  ;;  %v1240_v13 = vpop.f32.mrb[54].mxu1 }
 0x1f8   : > { %v1718_v14 = vadd.f32 %v3470_v54, %v1080_v12  ;;  %v1782_v15 = vadd.f32 %v3470_v54, %v1240_v13  ;;  %v1082_v16 = vpop.f32.mrb[55].mxu0  ;;  %v1242_v17 = vpop.f32.mrb[55].mxu1 }
 0x1f9   : > { %v2561_v18 = vpack.c.bf16 %v1717_v10, %v1716_v6  ;;  %v2593_v19 = vpack.c.bf16 %v1781_v11, %v1780_v7  ;;  %v1719_v20 = vadd.f32 %v3473_v55, %v1082_v16  ;;  %v1783_v21 = vadd.f32 %v3473_v55, %v1242_v17 }
 0x1fb   : > { %2202 = vst [vmem:[%s3485_s5 + $0xd0] sm:$0xff] %v2561_v18  ;;  %2234 = vst [vmem:[%s3485_s5 + $0x1d0] sm:$0xff] %v2593_v19  ;;  %v2562_v22 = vpack.c.bf16 %v1719_v20, %v1718_v14  ;;  %v2594_v23 = vpack.c.bf16 %v1783_v21, %v1782_v15 }
 0x1fd   : > { %2203 = vst [vmem:[%s3485_s5 + $0xd8] sm:$0xff] %v2562_v22  ;;  %2235 = vst [vmem:[%s3485_s5 + $0x1d8] sm:$0xff] %v2594_v23  ;;  %v1086_v24 = vpop.f32.mrb[56].mxu0  ;;  %v1246_v25 = vpop.f32.mrb[56].mxu1 }
 0x1fe   : > { %v1720_v26 = vadd.f32 %v3470_v54, %v1086_v24  ;;  %v1784_v27 = vadd.f32 %v3470_v54, %v1246_v25  ;;  %v1088_v28 = vpop.f32.mrb[57].mxu0  ;;  %v1248_v29 = vpop.f32.mrb[57].mxu1 }
 0x1ff   : > { %v1721_v30 = vadd.f32 %v3473_v55, %v1088_v28  ;;  %v1785_v31 = vadd.f32 %v3473_v55, %v1248_v29  ;;  %v1090_v32 = vpop.f32.mrb[58].mxu0  ;;  %v1250_v33 = vpop.f32.mrb[58].mxu1 }
 0x200   : > { %v1722_v34 = vadd.f32 %v3470_v54, %v1090_v32  ;;  %v1786_v35 = vadd.f32 %v3470_v54, %v1250_v33  ;;  %v1092_v36 = vpop.f32.mrb[59].mxu0  ;;  %v1252_v37 = vpop.f32.mrb[59].mxu1 }
 0x201   : > { %v2563_v38 = vpack.c.bf16 %v1721_v30, %v1720_v26  ;;  %v2595_v39 = vpack.c.bf16 %v1785_v31, %v1784_v27  ;;  %v1723_v40 = vadd.f32 %v3473_v55, %v1092_v36  ;;  %v1787_v41 = vadd.f32 %v3473_v55, %v1252_v37 }
 0x203   : > { %2204 = vst [vmem:[%s3485_s5 + $0xe0] sm:$0xff] %v2563_v38  ;;  %2236 = vst [vmem:[%s3485_s5 + $0x1e0] sm:$0xff] %v2595_v39  ;;  %v2564_v42 = vpack.c.bf16 %v1723_v40, %v1722_v34  ;;  %v2596_v43 = vpack.c.bf16 %v1787_v41, %v1786_v35 }
 0x205   : > { %2205 = vst [vmem:[%s3485_s5 + $0xe8] sm:$0xff] %v2564_v42  ;;  %2237 = vst [vmem:[%s3485_s5 + $0x1e8] sm:$0xff] %v2596_v43  ;;  %v1096_v44 = vpop.f32.mrb[60].mxu0  ;;  %v1256_v45 = vpop.f32.mrb[60].mxu1 }
 0x206   : > { %v1724_v46 = vadd.f32 %v3470_v54, %v1096_v44  ;;  %v1788_v47 = vadd.f32 %v3470_v54, %v1256_v45  ;;  %v1098_v48 = vpop.f32.mrb[61].mxu0  ;;  %v1258_v49 = vpop.f32.mrb[61].mxu1 }
 0x207   : > { %v1725_v50 = vadd.f32 %v3473_v55, %v1098_v48  ;;  %v1789_v51 = vadd.f32 %v3473_v55, %v1258_v49  ;;  %v1100_v52 = vpop.f32.mrb[62].mxu0  ;;  %v1260_v53 = vpop.f32.mrb[62].mxu1 }
 0x208   : > { %v1726_v56 = vadd.f32 %v3470_v54, %v1100_v52  ;;  %v1790_v57 = vadd.f32 %v3470_v54, %v1260_v53  ;;  %v1102_v58 = vpop.f32.mrb[63].mxu0  ;;  %v1262_v59 = vpop.f32.mrb[63].mxu1 }
 0x209   : > { %v2565_v60 = vpack.c.bf16 %v1725_v50, %v1724_v46  ;;  %v2597_v61 = vpack.c.bf16 %v1789_v51, %v1788_v47  ;;  %v1727_v62 = vadd.f32 %v3473_v55, %v1102_v58  ;;  %v1791_v63 = vadd.f32 %v3473_v55, %v1262_v59 }
 0x20b   : > { %2206 = vst [vmem:[%s3485_s5 + $0xf0] sm:$0xff] %v2565_v60  ;;  %2238 = vst [vmem:[%s3485_s5 + $0x1f0] sm:$0xff] %v2597_v61  ;;  %v2566_v54 = vpack.c.bf16 %v1727_v62, %v1726_v56  ;;  %v2598_v0 = vpack.c.bf16 %v1791_v63, %v1790_v57 }
 0x20d   : > { %2207 = vst [vmem:[%s3485_s5 + $0xf8] sm:$0xff] %v2566_v54  ;;  %2239 = vst [vmem:[%s3485_s5 + $0x1f8] sm:$0xff] %v2598_v0 }
 0x20e   : > { %2920 = shalt.err (!%p2917_p1)
}
 0x20f   : > { %s2921_s26 = scalar_lea.hbm %s3673_s1, 8192  ;;  %s2925_s27 = scalar_lea.hbm %s3817_s8, 49152 }
 0x210   : > { %p2922_p0 = scmp.ne.s32.totalorder %s3673_s1, %s2921_s26  ;;  %p2926_p8 = scmp.lt.u32.totalorder %s3673_s1, %s3817_s8 }
 0x211   : > { %p2927_p5 = scmp.lt.u32.totalorder %s2925_s27, %s2921_s26  ;;  %p2929_p2 = scmp.lt.u32.totalorder %s2921_s26, %s3673_s1 }
 0x212   : > { %p2923_p7 = pnand %p2922_p0, %p3818_p11 }
 0x213   : > { %p2928_p6 = por %p2927_p5, %p2926_p8 }
 0x214   : > { %p2924_p13 = pneg %p2923_p7 }
 0x215   : > { %p2930_p10 = por %p2929_p2, %p2928_p6 }
 0x217   : > { %p2931_p12 = pnand %p2930_p10, %p2924_p13 }
 0x219   : > { %2934 = shalt.err (!%p2931_p12)
}
 0x21a   : > { %s3069_s5 = smov 128   ;;  %s3070_s10 = smov 384  }
 0x21b   : > { %s3071_s24 = smov 8  }
 0x21c   : > { %2622 = dma.vmem_to_hbm [thread:$0]  (%p3818_p11), %s3675_s21, 8192, %s3673_s1, %s3683_s22, %s3069_s5, %s3070_s10, %s3071_s24  }
 0x21d PF: > { %s3819_s17 = sld [smem:[#allocation24_spill]]  ;;  %p2639_p3 = scmp.ge.s32.totalorder %s3057_s25, 2 }
 0x21e   : > { %s2272_s6 = sand.u32 1, %s3005_s12  }
 0x21f   : > { %s2273_s3 = scalar_lea.sflag [#allocation5], %s2272_s6 }
 0x223   : > { %p3820_p9 = scmp.ne.s32.totalorder %s3819_s17, 0 }
 0x225   : > { %p2635_p4 = pnand %p2639_p3, %p3820_p9 }
 0x227   : > { %3000 = dma.done.wait (!%p2635_p4), %s2273_s3, 8192  }
 0x228   : > { %3002 = vsyncadd (!%p2635_p4), %s2273_s3, 4294959104  ;;  %s22_s25 = sadd.s32 1, %s3057_s25   ;;  %s3822_s28 = sld [smem:[#allocation13_spill]] }
 0x229   : > { %p3712_p1 = scmp.ge.s32.totalorder %s22_s25, 8   ;;  %s3823_s14 = sld [smem:[#allocation23_spill]] }
 0x22a   : > { %s3824_s21 = sld [smem:[#allocation14_spill]]  ;;  %s3825_s17 = sld [smem:[#allocation21_spill]] }
 0x22b   : > { %s3826_s1 = sld [smem:[#allocation15_spill]]  ;;  %s3827_s20 = sld [smem:[#allocation22_spill]] }
 0x22c   : > { %s3828_s22 = sld [smem:[#allocation18_spill]]  ;;  %s3829_s30 = sld [smem:[#allocation19_spill]] }
 0x22d   : > { %s3830_s24 = sld [smem:[#allocation20_spill]]  ;;  %s3831_s12 = smov %s3009_s13 }
 0x22e   : > { %s3832_s13 = smov %s3822_s28  ;;  %s3833_s15 = smov %s3021_s16 }
 0x22f   : > { %s3835_s18 = smov %s3033_s19  ;;  %21 = sbr.rel (!%p3712_p1) target bundleno = 16 (0x10), region = 109 }
 0x230   : > { %s3834_s16 = smov %s3824_s21  ;;  %s3837_s21 = smov %s3049_s23 }
 0x231   : > { %s3836_s19 = smov %s3826_s1 }
 0x232   : > { %s3838_s23 = smov %s3829_s30 }
 0x236   :  { %2278 = vsyncpa [#allocation4], 1 }
 0x237   :  { %2280 = vsyncpa [#allocation4 + $0x1], 1 }
 0x238   :  { %2281 = vsyncpa [#allocation7], 1 }
 0x239   :  { %2283 = vsyncpa [#allocation7 + $0x1], 1 }
 0x23a   :  { %2284 = vsyncpa [#allocation5], 1 }
 0x23b   :  { %2286 = vsyncpa [#allocation5 + $0x1], 1 }

</bundles_post_ra>
